<compile_context>
chip_gen: v6e
topology: v6e:2x2x1
jax: 0.10.0
libtpu: 0.0.40
codegen_flags: <defaults>
</compile_context>

<pallas_src>
import functools

import jax
import jax.numpy as jnp
from jax import lax
from jax.experimental import pallas as pl
from jax.experimental.pallas import tpu as pltpu


def _vmem_plan():
    """Per-generation VMEM budgeting -> (tile budget bytes, vmem_limit_bytes)."""
    cap = None
    try:
        cap = getattr(pltpu.get_tpu_info(), "vmem_capacity_bytes", None)
    except Exception:                      # not on TPU / API drift
        cap = None
    if not cap or cap <= 0:
        cap = 64 << 20                     # assume the smallest (v7x-sized) VMEM
    budget = max(8 << 20, min(int(cap * 3 // 8), 64 << 20))   # 128MiB->48, 64MiB->24
    limit = max(budget + (8 << 20), min(int(cap * 5 // 8), 96 << 20))  # ->80 / ->40
    return budget, limit


def _pick_tile_rows(B, H, W, C, *, vmem_budget_bytes, min_grid_steps=4):
    """Largest TH (dividing H) whose per-step working set fits the VMEM budget.

    Constraints:
      * (TH*W) % 8 == 0 (or TH == H) so the (B, H*W, C) blocks stay
        sublane-tileable and the in-kernel (TH*W, C) <-> (TH, W, C) reshapes
        are layout bookkeeping only.
      * B * (H // TH) >= min_grid_steps when achievable, so megacore parts
        (v7x has 2 TensorCores) always get parallel grid steps to shard.
    """
    def fits(th):
        m = th * W
        io = 2 * 4 * m * C * 4                  # xl/xr/ol/or blocks, double-buffered f32
        inter = 64 * m * C + 12 * th * W * W    # y/q/v/f (+bf16 copies), attn/e/e_bf16
        return io + inter <= vmem_budget_bytes

    legal = [t for t in range(1, H + 1)
             if H % t == 0 and ((t * W) % 8 == 0 or t == H)]
    need_splits = -(-min_grid_steps // max(B, 1))            # ceil(min_steps / B)
    capped = [t for t in legal if H // t >= need_splits] or legal

    fitting = [t for t in capped if fits(t)]
    return max(fitting) if fitting else min(capped)          # best effort if nothing fits


def scam_kernel(xl_ref, xr_ref, vec_ref, w_ref, ol_ref, or_ref,
                *, W, matmul_dtype, approx_recip, eps=1e-6):
    f32 = jnp.float32
    M, C = xl_ref.shape                  # M = TH * W
    TH = M // W

    xl = xl_ref[...].astype(f32)         # (M, C)
    xr = xr_ref[...].astype(f32)

    vec = vec_ref[...]                   # (8, C) f32, resident across grid steps
    colsum_l, const_l, b2_l = vec[0], vec[1], vec[2]
    colsum_r, const_r, b2_r = vec[3], vec[4], vec[5]
    beta, gamma = vec[6], vec[7]

    w = w_ref[...]                       # (2, C, 2C) matmul_dtype, resident
    wcat_l, wcat_r = w[0], w[1]

    def ln_stats(x):
        # LayerNorm2d statistics per spatial location (f32 VPU math).
        mu = jnp.mean(x, axis=-1, keepdims=True)
        var = jnp.mean(x * x, axis=-1, keepdims=True) - mu * mu
        return mu, lax.rsqrt(var + eps)

    def fused_proj(x, wcat, colsum, const, b2):
        # One (M, C) @ (C, 2C) MXU call yields both 1x1-conv projections.
        # LayerNorm gain (+ attention scale, left view) is pre-folded into
        # the first C output columns; the per-row correction is
        #   q = inv_std * (x @ w1s - mu * colsum(w1s)) + const
        #   v = x @ w2 + b2
        mu, inv_std = ln_stats(x)
        y = lax.dot_general(x.astype(matmul_dtype), wcat,
                            dimension_numbers=(((1,), (0,)), ((), ())),
                            preferred_element_type=f32)          # (M, 2C)
        q = inv_std * (y[:, :C] - mu * colsum) + const
        v = y[:, C:] + b2
        return q, v

    q_l, v_l = fused_proj(xl, wcat_l, colsum_l, const_l, b2_l)
    q_r, v_r = fused_proj(xr, wcat_r, colsum_r, const_r, b2_r)

    # Per image-row (epipolar) cross attention: split rows back out.
    # (TH*W) % 8 == 0 keeps these reshapes pure tile bookkeeping.
    q_l3 = q_l.reshape(TH, W, C).astype(matmul_dtype)
    q_r3 = q_r.reshape(TH, W, C).astype(matmul_dtype)
    v_l3 = v_l.reshape(TH, W, C).astype(matmul_dtype)
    v_r3 = v_r.reshape(TH, W, C).astype(matmul_dtype)

    # attn[t, i, j] = <Q_l[t, i, :], Q_r[t, j, :]>  (scale already folded in).
    attn = lax.dot_general(q_l3, q_r3,
                           dimension_numbers=(((2,), (2,)), ((0,), (0,))),
                           preferred_element_type=f32)           # (TH, W, W)

    # One exp feeds both softmax directions (the shared per-slice max cancels
    # inside each normalization).  A direction whose own max sits ~88 below
    # the slice max would underflow; LN-bounded logits never get close, and
    # the clamp below keeps the reciprocals finite regardless.
    m = jnp.max(attn, axis=2, keepdims=True)
    m = jnp.max(m, axis=1, keepdims=True)
    e = jnp.exp(attn - m)                                        # (TH, W, W) f32

    row_sum = jnp.sum(e, axis=2, keepdims=True)                  # (TH, W, 1)
    # Column sums, produced directly in (TH, W, 1) orientation by a tiny
    # ones-matvec that mirrors the f_l2r contraction (avoids a minor-dim
    # relayout of a (TH, 1, W) tensor and keeps the sum in f32).
    ones_col = jnp.ones((TH, W, 1), f32)
    col_sum = lax.dot_general(e, ones_col,
                              dimension_numbers=(((1,), (1,)), ((0,), (0,))),
                              preferred_element_type=f32)        # (TH, W, 1)

    # Deferred normalization: contract the *unnormalized* exp with V on the
    # MXU, then scale by the reciprocal sums (scaling commutes with the
    # contraction).  The probability tensors are never materialized.
    e_mm = e.astype(matmul_dtype)
    # f_r2l[t, i, c] = sum_j e[t, i, j] * V_r[t, j, c]
    f_r2l = lax.dot_general(e_mm, v_r3,
                            dimension_numbers=(((2,), (1,)), ((0,), (0,))),
                            preferred_element_type=f32)          # (TH, W, C)
    # f_l2r[t, j, c] = sum_i e[t, i, j] * V_l[t, i, c]
    f_l2r = lax.dot_general(e_mm, v_l3,
                            dimension_numbers=(((1,), (1,)), ((0,), (0,))),
                            preferred_element_type=f32)          # (TH, W, C)

    tiny = jnp.float32(1e-30)
    f_r2l = f_r2l * pl.reciprocal(jnp.maximum(row_sum, tiny), approx=approx_recip)
    f_l2r = f_l2r * pl.reciprocal(jnp.maximum(col_sum, tiny), approx=approx_recip)

    ol_ref[...] = (xl + f_r2l.reshape(M, C) * beta).astype(ol_ref.dtype)
    or_ref[...] = (xr + f_l2r.reshape(M, C) * gamma).astype(or_ref.dtype)


def _prep_params(params, C, scale, matmul_dtype):
    """Host-side parameter folding -> ((8, C) f32 vectors, (2, C, 2C) weights)."""
    c_ = lambda a: jnp.asarray(a, jnp.float32).reshape(C)
    w_ = lambda a: jnp.asarray(a, jnp.float32).reshape(C, C).T   # applied as x @ w

    g_l, bn_l = c_(params["norm_l_w"]), c_(params["norm_l_b"])
    g_r, bn_r = c_(params["norm_r_w"]), c_(params["norm_r_b"])
    w1_l, b1_l = w_(params["l_proj1_w"]), c_(params["l_proj1_b"])
    w1_r, b1_r = w_(params["r_proj1_w"]), c_(params["r_proj1_b"])
    w2_l, b2_l = w_(params["l_proj2_w"]), c_(params["l_proj2_b"])
    w2_r, b2_r = w_(params["r_proj2_w"]), c_(params["r_proj2_b"])

    # Fold LayerNorm gain (and, for the left view, the attention scale) into
    # the Q projection:
    #   scale * (LN(x) @ w1 + b1)
    #     = inv_std * (x @ w1s - mu * colsum(w1s)) + const
    #   with w1s = scale * diag(g) @ w1,  const = scale * (bn @ w1 + b1).
    w1s_l = scale * (g_l[:, None] * w1_l)
    w1s_r = g_r[:, None] * w1_r
    colsum_l = jnp.sum(w1s_l, axis=0)
    colsum_r = jnp.sum(w1s_r, axis=0)
    const_l = scale * (bn_l @ w1_l + b1_l)
    const_r = bn_r @ w1_r + b1_r

    vecs = jnp.stack([colsum_l, const_l, b2_l,
                      colsum_r, const_r, b2_r,
                      c_(params["beta"]), c_(params["gamma"])])          # (8, C)
    wcat = jnp.stack([jnp.concatenate([w1s_l, w2_l], axis=1),
                      jnp.concatenate([w1s_r, w2_r], axis=1)])           # (2, C, 2C)
    return vecs, wcat.astype(matmul_dtype)


def scam_forward_nhwc(x_l, x_r, params, *, fast=True, tile_rows=None):
    """SCAM forward. x_l, x_r: (B, H, W, C) float32. Returns NHWC outputs.

    fast=True casts MXU operands to bfloat16 (f32 accumulation) and uses the
    EUP approximate reciprocal for the softmax denominators; elementwise math
    stays f32 on all chip generations.
    """
    B, H, W, C = x_l.shape
    scale = float(C) ** (-0.5)
    matmul_dtype = jnp.bfloat16 if fast else jnp.float32

    vmem_budget, vmem_limit = _vmem_plan()
    TH = tile_rows if tile_rows is not None else _pick_tile_rows(
        B, H, W, C, vmem_budget_bytes=vmem_budget)
    assert H % TH == 0, (H, TH)

    # Flat (B, H*W, C) view: one grid step = TH image rows of both views.
    xl3 = x_l.reshape(B, H * W, C)
    xr3 = x_r.reshape(B, H * W, C)
    vecs, wcat = _prep_params(params, C, scale, matmul_dtype)

    x_spec = pl.BlockSpec((None, TH * W, C), lambda b, t: (b, t, 0))
    vec_spec = pl.BlockSpec((8, C), lambda b, t: (0, 0))
    w_spec = pl.BlockSpec((2, C, 2 * C), lambda b, t: (0, 0, 0))

    out_l, out_r = pl.pallas_call(
        functools.partial(scam_kernel, W=W, matmul_dtype=matmul_dtype,
                          approx_recip=fast),
        out_shape=(jax.ShapeDtypeStruct((B, H * W, C), jnp.float32),
                   jax.ShapeDtypeStruct((B, H * W, C), jnp.float32)),
        grid_spec=pltpu.PrefetchScalarGridSpec(
            num_scalar_prefetch=0,
            grid=(B, H // TH),
            in_specs=[x_spec, x_spec, vec_spec, w_spec],
            out_specs=[x_spec, x_spec]),
        compiler_params=pltpu.CompilerParams(
            dimension_semantics=("parallel", "parallel"),
            vmem_limit_bytes=vmem_limit),
    )(xl3, xr3, vecs, wcat)

    return out_l.reshape(B, H, W, C), out_r.reshape(B, H, W, C)


def scam_forward(x_l, x_r, params, **kwargs):
    """Drop-in NCHW (PyTorch-layout) wrapper.  The NCHW<->NHWC transposes cost
    four extra HBM passes; prefer scam_forward_nhwc inside an NHWC model."""
    xl = jnp.transpose(x_l, (0, 2, 3, 1))
    xr = jnp.transpose(x_r, (0, 2, 3, 1))
    ol, o_r = scam_forward_nhwc(xl, xr, params, **kwargs)
    return jnp.transpose(ol, (0, 3, 1, 2)), jnp.transpose(o_r, (0, 3, 1, 2))


def scam_reference_nhwc(x_l, x_r, params):
    """Pure-JAX NHWC reference matching the PyTorch forward."""
    C = x_l.shape[-1]
    scale = float(C) ** (-0.5)

    def ln(x, w, b, eps=1e-6):
        mu = jnp.mean(x, axis=-1, keepdims=True)
        var = jnp.mean((x - mu) ** 2, axis=-1, keepdims=True)
        return (x - mu) / jnp.sqrt(var + eps) * w.reshape(C) + b.reshape(C)

    def proj(x, w, b):
        return jnp.einsum("bhwc,oc->bhwo", x, w.reshape(C, C)) + b.reshape(C)

    q_l = proj(ln(x_l, params["norm_l_w"], params["norm_l_b"]),
               params["l_proj1_w"], params["l_proj1_b"])
    q_r = proj(ln(x_r, params["norm_r_w"], params["norm_r_b"]),
               params["r_proj1_w"], params["r_proj1_b"])
    v_l = proj(x_l, params["l_proj2_w"], params["l_proj2_b"])
    v_r = proj(x_r, params["r_proj2_w"], params["r_proj2_b"])

    attn = jnp.einsum("bhic,bhjc->bhij", q_l, q_r) * scale
    f_r2l = jnp.einsum("bhij,bhjc->bhic", jax.nn.softmax(attn, axis=-1), v_r)
    attn_t = jnp.swapaxes(attn, -1, -2)
    f_l2r = jnp.einsum("bhji,bhic->bhjc", jax.nn.softmax(attn_t, axis=-1), v_l)
    return (x_l + f_r2l * params["beta"].reshape(C),
            x_r + f_l2r * params["gamma"].reshape(C))


if __name__ == "__main__":
    B, C, H, W = 2, 16, 8, 16

    key = jax.random.PRNGKey(0)
    keys = jax.random.split(key, 16)

    # Deterministic synthetic parameters (module __init__ shapes).  beta/gamma
    # are zeros in the PyTorch init; use small random values so the attention
    # path actually contributes to the output.
    params = {
        "norm_l_w": jax.random.normal(keys[0], (C,), jnp.float32) * 0.1 + 1.0,
        "norm_l_b": jax.random.normal(keys[1], (C,), jnp.float32) * 0.1,
        "norm_r_w": jax.random.normal(keys[2], (C,), jnp.float32) * 0.1 + 1.0,
        "norm_r_b": jax.random.normal(keys[3], (C,), jnp.float32) * 0.1,
        "l_proj1_w": jax.random.normal(keys[4], (C, C), jnp.float32) * 0.1,
        "l_proj1_b": jax.random.normal(keys[5], (C,), jnp.float32) * 0.1,
        "r_proj1_w": jax.random.normal(keys[6], (C, C), jnp.float32) * 0.1,
        "r_proj1_b": jax.random.normal(keys[7], (C,), jnp.float32) * 0.1,
        "l_proj2_w": jax.random.normal(keys[8], (C, C), jnp.float32) * 0.1,
        "l_proj2_b": jax.random.normal(keys[9], (C,), jnp.float32) * 0.1,
        "r_proj2_w": jax.random.normal(keys[10], (C, C), jnp.float32) * 0.1,
        "r_proj2_b": jax.random.normal(keys[11], (C,), jnp.float32) * 0.1,
        "beta": jax.random.normal(keys[12], (1, C, 1, 1), jnp.float32) * 0.1,
        "gamma": jax.random.normal(keys[13], (1, C, 1, 1), jnp.float32) * 0.1,
    }

    # NHWC inputs (kernel-native layout; no NCHW<->NHWC HBM passes).
    x_l = jax.random.normal(keys[14], (B, H, W, C), jnp.float32)
    x_r = jax.random.normal(keys[15], (B, H, W, C), jnp.float32)

    ref_l, ref_r = scam_reference_nhwc(x_l, x_r, params)

    # Exact path (f32 matmul operands, exact reciprocal): tight check.
    out_l, out_r = scam_forward_nhwc(x_l, x_r, params, fast=False)
    out_l, out_r = jax.block_until_ready((out_l, out_r))
    assert jnp.allclose(out_l, ref_l, rtol=1e-4, atol=1e-4)
    assert jnp.allclose(out_r, ref_r, rtol=1e-4, atol=1e-4)

    # Fast path (default): bf16 MXU operands + approx reciprocal.
    fast_l, fast_r = scam_forward_nhwc(x_l, x_r, params)
    fast_l, fast_r = jax.block_until_ready((fast_l, fast_r))
    assert jnp.allclose(fast_l, ref_l, rtol=2e-2, atol=2e-2)
    assert jnp.allclose(fast_r, ref_r, rtol=2e-2, atol=2e-2)

    # Drop-in NCHW wrapper parity with the PyTorch layout.
    nl, nr = scam_forward(jnp.transpose(x_l, (0, 3, 1, 2)),
                          jnp.transpose(x_r, (0, 3, 1, 2)), params, fast=False)
    nl, nr = jax.block_until_ready((nl, nr))
    assert jnp.allclose(jnp.transpose(nl, (0, 2, 3, 1)), ref_l, rtol=1e-4, atol=1e-4)
    assert jnp.allclose(jnp.transpose(nr, (0, 2, 3, 1)), ref_r, rtol=1e-4, atol=1e-4)

    print("KERNEL_OK")
</pallas_src>

<mosaic_0001>
module attributes {stable_mosaic.version = 11 : i64} {
  func.func @scam_kernel(%arg0: i32, %arg1: i32, %arg2: memref<1x64x16xf32, #tpu.memory_space<vmem>>, %arg3: memref<1x64x16xf32, #tpu.memory_space<vmem>>, %arg4: memref<8x16xf32, #tpu.memory_space<vmem>>, %arg5: memref<2x16x32xf32, #tpu.memory_space<vmem>>, %arg6: memref<1x64x16xf32, #tpu.memory_space<vmem>>, %arg7: memref<1x64x16xf32, #tpu.memory_space<vmem>>) attributes {dimension_semantics = [#tpu.dimension_semantics<parallel>, #tpu.dimension_semantics<parallel>], iteration_bounds = array<i64: 2, 2>, scalar_prefetch = 0 : i64, scratch_operands = 0 : i64, tpu.core_type = #tpu.core_type<tc>, window_params = [{transform_indices = @transform_0, window_bounds = array<i64: 1, 64, 16>}, {transform_indices = @transform_1, window_bounds = array<i64: 1, 64, 16>}, {pipeline_mode = #tpu.pipeline_mode<synchronous>, transform_indices = @transform_2, window_bounds = array<i64: 8, 16>}, {pipeline_mode = #tpu.pipeline_mode<synchronous>, transform_indices = @transform_3, window_bounds = array<i64: 2, 16, 32>}, {transform_indices = @transform_4, window_bounds = array<i64: 1, 64, 16>}, {transform_indices = @transform_5, window_bounds = array<i64: 1, 64, 16>}]} {
    %c0 = arith.constant 0 : index
    %c0_0 = arith.constant 0 : index
    %c0_1 = arith.constant 0 : index
    %0 = vector.load %arg2[%c0, %c0_0, %c0_1] : memref<1x64x16xf32, #tpu.memory_space<vmem>>, vector<1x64x16xf32>
    %1 = vector.shape_cast %0 : vector<1x64x16xf32> to vector<64x16xf32>
    %c0_2 = arith.constant 0 : index
    %c0_3 = arith.constant 0 : index
    %c0_4 = arith.constant 0 : index
    %2 = vector.load %arg3[%c0_2, %c0_3, %c0_4] : memref<1x64x16xf32, #tpu.memory_space<vmem>>, vector<1x64x16xf32>
    %3 = vector.shape_cast %2 : vector<1x64x16xf32> to vector<64x16xf32>
    %c0_5 = arith.constant 0 : index
    %c0_6 = arith.constant 0 : index
    %4 = vector.load %arg4[%c0_5, %c0_6] : memref<8x16xf32, #tpu.memory_space<vmem>>, vector<8x16xf32>
    %5 = vector.extract_strided_slice %4 {offsets = [0, 0], sizes = [1, 16], strides = [1, 1]} : vector<8x16xf32> to vector<1x16xf32>
    %6 = vector.shape_cast %5 : vector<1x16xf32> to vector<16xf32>
    %7 = vector.extract_strided_slice %4 {offsets = [1, 0], sizes = [1, 16], strides = [1, 1]} : vector<8x16xf32> to vector<1x16xf32>
    %8 = vector.shape_cast %7 : vector<1x16xf32> to vector<16xf32>
    %9 = vector.extract_strided_slice %4 {offsets = [2, 0], sizes = [1, 16], strides = [1, 1]} : vector<8x16xf32> to vector<1x16xf32>
    %10 = vector.shape_cast %9 : vector<1x16xf32> to vector<16xf32>
    %11 = vector.extract_strided_slice %4 {offsets = [3, 0], sizes = [1, 16], strides = [1, 1]} : vector<8x16xf32> to vector<1x16xf32>
    %12 = vector.shape_cast %11 : vector<1x16xf32> to vector<16xf32>
    %13 = vector.extract_strided_slice %4 {offsets = [4, 0], sizes = [1, 16], strides = [1, 1]} : vector<8x16xf32> to vector<1x16xf32>
    %14 = vector.shape_cast %13 : vector<1x16xf32> to vector<16xf32>
    %15 = vector.extract_strided_slice %4 {offsets = [5, 0], sizes = [1, 16], strides = [1, 1]} : vector<8x16xf32> to vector<1x16xf32>
    %16 = vector.shape_cast %15 : vector<1x16xf32> to vector<16xf32>
    %17 = vector.extract_strided_slice %4 {offsets = [6, 0], sizes = [1, 16], strides = [1, 1]} : vector<8x16xf32> to vector<1x16xf32>
    %18 = vector.shape_cast %17 : vector<1x16xf32> to vector<16xf32>
    %19 = vector.extract_strided_slice %4 {offsets = [7, 0], sizes = [1, 16], strides = [1, 1]} : vector<8x16xf32> to vector<1x16xf32>
    %20 = vector.shape_cast %19 : vector<1x16xf32> to vector<16xf32>
    %c0_7 = arith.constant 0 : index
    %c0_8 = arith.constant 0 : index
    %c0_9 = arith.constant 0 : index
    %21 = vector.load %arg5[%c0_7, %c0_8, %c0_9] : memref<2x16x32xf32, #tpu.memory_space<vmem>>, vector<2x16x32xf32>
    %22 = vector.extract_strided_slice %21 {offsets = [0, 0, 0], sizes = [1, 16, 32], strides = [1, 1, 1]} : vector<2x16x32xf32> to vector<1x16x32xf32>
    %23 = vector.shape_cast %22 : vector<1x16x32xf32> to vector<16x32xf32>
    %24 = vector.extract_strided_slice %21 {offsets = [1, 0, 0], sizes = [1, 16, 32], strides = [1, 1, 1]} : vector<2x16x32xf32> to vector<1x16x32xf32>
    %25 = vector.shape_cast %24 : vector<1x16x32xf32> to vector<16x32xf32>
    %cst = arith.constant dense<0.000000e+00> : vector<64xf32>
    %26 = vector.multi_reduction <add>, %1, %cst [1] : vector<64x16xf32> to vector<64xf32>
    %27 = vector.shape_cast %26 : vector<64xf32> to vector<64x1xf32>
    %cst_10 = arith.constant 1.600000e+01 : f32
    %28 = vector.broadcast %cst_10 : f32 to vector<64x1xf32>
    %29 = arith.divf %27, %28 : vector<64x1xf32>
    %30 = arith.mulf %1, %1 : vector<64x16xf32>
    %cst_11 = arith.constant dense<0.000000e+00> : vector<64xf32>
    %31 = vector.multi_reduction <add>, %30, %cst_11 [1] : vector<64x16xf32> to vector<64xf32>
    %32 = vector.shape_cast %31 : vector<64xf32> to vector<64x1xf32>
    %cst_12 = arith.constant 1.600000e+01 : f32
    %33 = vector.broadcast %cst_12 : f32 to vector<64x1xf32>
    %34 = arith.divf %32, %33 : vector<64x1xf32>
    %35 = arith.mulf %29, %29 : vector<64x1xf32>
    %36 = arith.subf %34, %35 : vector<64x1xf32>
    %cst_13 = arith.constant 9.99999997E-7 : f32
    %37 = vector.broadcast %cst_13 : f32 to vector<64x1xf32>
    %38 = arith.addf %36, %37 : vector<64x1xf32>
    %39 = math.rsqrt %38 : vector<64x1xf32>
    %cst_14 = arith.constant dense<0.000000e+00> : vector<64x32xf32>
    %40 = tpu.matmul %1, %23, %cst_14 {dimension_numbers = #tpu.dot_dimension_numbers<[1], [0], [0], [1], [0, 0, 1, 1], [], []>} : vector<64x16xf32>, vector<16x32xf32>, vector<64x32xf32> -> vector<64x32xf32>
    %41 = vector.extract_strided_slice %40 {offsets = [0, 0], sizes = [64, 16], strides = [1, 1]} : vector<64x32xf32> to vector<64x16xf32>
    %42 = vector.shape_cast %6 : vector<16xf32> to vector<1x16xf32>
    %43 = vector.broadcast %29 : vector<64x1xf32> to vector<64x16xf32>
    %44 = vector.broadcast %42 : vector<1x16xf32> to vector<64x16xf32>
    %45 = arith.mulf %43, %44 : vector<64x16xf32>
    %46 = arith.subf %41, %45 : vector<64x16xf32>
    %47 = vector.broadcast %39 : vector<64x1xf32> to vector<64x16xf32>
    %48 = arith.mulf %47, %46 : vector<64x16xf32>
    %49 = vector.shape_cast %8 : vector<16xf32> to vector<1x16xf32>
    %50 = vector.broadcast %49 : vector<1x16xf32> to vector<64x16xf32>
    %51 = arith.addf %48, %50 : vector<64x16xf32>
    %52 = vector.extract_strided_slice %40 {offsets = [0, 16], sizes = [64, 16], strides = [1, 1]} : vector<64x32xf32> to vector<64x16xf32>
    %53 = vector.shape_cast %10 : vector<16xf32> to vector<1x16xf32>
    %54 = vector.broadcast %53 : vector<1x16xf32> to vector<64x16xf32>
    %55 = arith.addf %52, %54 : vector<64x16xf32>
    %cst_15 = arith.constant dense<0.000000e+00> : vector<64xf32>
    %56 = vector.multi_reduction <add>, %3, %cst_15 [1] : vector<64x16xf32> to vector<64xf32>
    %57 = vector.shape_cast %56 : vector<64xf32> to vector<64x1xf32>
    %cst_16 = arith.constant 1.600000e+01 : f32
    %58 = vector.broadcast %cst_16 : f32 to vector<64x1xf32>
    %59 = arith.divf %57, %58 : vector<64x1xf32>
    %60 = arith.mulf %3, %3 : vector<64x16xf32>
    %cst_17 = arith.constant dense<0.000000e+00> : vector<64xf32>
    %61 = vector.multi_reduction <add>, %60, %cst_17 [1] : vector<64x16xf32> to vector<64xf32>
    %62 = vector.shape_cast %61 : vector<64xf32> to vector<64x1xf32>
    %cst_18 = arith.constant 1.600000e+01 : f32
    %63 = vector.broadcast %cst_18 : f32 to vector<64x1xf32>
    %64 = arith.divf %62, %63 : vector<64x1xf32>
    %65 = arith.mulf %59, %59 : vector<64x1xf32>
    %66 = arith.subf %64, %65 : vector<64x1xf32>
    %cst_19 = arith.constant 9.99999997E-7 : f32
    %67 = vector.broadcast %cst_19 : f32 to vector<64x1xf32>
    %68 = arith.addf %66, %67 : vector<64x1xf32>
    %69 = math.rsqrt %68 : vector<64x1xf32>
    %cst_20 = arith.constant dense<0.000000e+00> : vector<64x32xf32>
    %70 = tpu.matmul %3, %25, %cst_20 {dimension_numbers = #tpu.dot_dimension_numbers<[1], [0], [0], [1], [0, 0, 1, 1], [], []>} : vector<64x16xf32>, vector<16x32xf32>, vector<64x32xf32> -> vector<64x32xf32>
    %71 = vector.extract_strided_slice %70 {offsets = [0, 0], sizes = [64, 16], strides = [1, 1]} : vector<64x32xf32> to vector<64x16xf32>
    %72 = vector.shape_cast %12 : vector<16xf32> to vector<1x16xf32>
    %73 = vector.broadcast %59 : vector<64x1xf32> to vector<64x16xf32>
    %74 = vector.broadcast %72 : vector<1x16xf32> to vector<64x16xf32>
    %75 = arith.mulf %73, %74 : vector<64x16xf32>
    %76 = arith.subf %71, %75 : vector<64x16xf32>
    %77 = vector.broadcast %69 : vector<64x1xf32> to vector<64x16xf32>
    %78 = arith.mulf %77, %76 : vector<64x16xf32>
    %79 = vector.shape_cast %14 : vector<16xf32> to vector<1x16xf32>
    %80 = vector.broadcast %79 : vector<1x16xf32> to vector<64x16xf32>
    %81 = arith.addf %78, %80 : vector<64x16xf32>
    %82 = vector.extract_strided_slice %70 {offsets = [0, 16], sizes = [64, 16], strides = [1, 1]} : vector<64x32xf32> to vector<64x16xf32>
    %83 = vector.shape_cast %16 : vector<16xf32> to vector<1x16xf32>
    %84 = vector.broadcast %83 : vector<1x16xf32> to vector<64x16xf32>
    %85 = arith.addf %82, %84 : vector<64x16xf32>
    %86 = vector.shape_cast %51 : vector<64x16xf32> to vector<4x16x16xf32>
    %87 = vector.shape_cast %81 : vector<64x16xf32> to vector<4x16x16xf32>
    %88 = vector.shape_cast %55 : vector<64x16xf32> to vector<4x16x16xf32>
    %89 = vector.shape_cast %85 : vector<64x16xf32> to vector<4x16x16xf32>
    %cst_21 = arith.constant dense<0.000000e+00> : vector<4x16x16xf32>
    %90 = tpu.matmul %86, %87, %cst_21 {dimension_numbers = #tpu.dot_dimension_numbers<[2], [2], [1], [1], [0, 0, 0, 1, 1, 1], [0], [0]>} : vector<4x16x16xf32>, vector<4x16x16xf32>, vector<4x16x16xf32> -> vector<4x16x16xf32>
    %cst_22 = arith.constant dense<0xFF800000> : vector<4x16xf32>
    %91 = vector.multi_reduction <maximumf>, %90, %cst_22 [2] : vector<4x16x16xf32> to vector<4x16xf32>
    %92 = vector.shape_cast %91 : vector<4x16xf32> to vector<4x16x1xf32>
    %cst_23 = arith.constant dense<0xFF800000> : vector<4x1xf32>
    %93 = vector.multi_reduction <maximumf>, %92, %cst_23 [1] : vector<4x16x1xf32> to vector<4x1xf32>
    %94 = vector.shape_cast %93 : vector<4x1xf32> to vector<4x1x1xf32>
    %95 = vector.broadcast %94 : vector<4x1x1xf32> to vector<4x16x16xf32>
    %96 = arith.subf %90, %95 : vector<4x16x16xf32>
    %97 = math.exp %96 : vector<4x16x16xf32>
    %cst_24 = arith.constant dense<0.000000e+00> : vector<4x16xf32>
    %98 = vector.multi_reduction <add>, %97, %cst_24 [2] : vector<4x16x16xf32> to vector<4x16xf32>
    %99 = vector.shape_cast %98 : vector<4x16xf32> to vector<4x16x1xf32>
    %cst_25 = arith.constant 1.000000e+00 : f32
    %100 = vector.broadcast %cst_25 : f32 to vector<4x16x1xf32>
    %cst_26 = arith.constant dense<0.000000e+00> : vector<4x16x1xf32>
    %101 = tpu.matmul %97, %100, %cst_26 {dimension_numbers = #tpu.dot_dimension_numbers<[1], [1], [2], [2], [0, 0, 0, 2, 1, 2], [0], [0]>} : vector<4x16x16xf32>, vector<4x16x1xf32>, vector<4x16x1xf32> -> vector<4x16x1xf32>
    %cst_27 = arith.constant dense<0.000000e+00> : vector<4x16x16xf32>
    %102 = tpu.matmul %97, %89, %cst_27 {dimension_numbers = #tpu.dot_dimension_numbers<[2], [1], [1], [2], [0, 0, 0, 1, 1, 2], [0], [0]>} : vector<4x16x16xf32>, vector<4x16x16xf32>, vector<4x16x16xf32> -> vector<4x16x16xf32>
    %cst_28 = arith.constant dense<0.000000e+00> : vector<4x16x16xf32>
    %103 = tpu.matmul %97, %88, %cst_28 {dimension_numbers = #tpu.dot_dimension_numbers<[1], [1], [2], [2], [0, 0, 0, 2, 1, 2], [0], [0]>} : vector<4x16x16xf32>, vector<4x16x16xf32>, vector<4x16x16xf32> -> vector<4x16x16xf32>
    %cst_29 = arith.constant 1.000000e-30 : f32
    %104 = vector.broadcast %cst_29 : f32 to vector<4x16x1xf32>
    %105 = arith.maximumf %99, %104 : vector<4x16x1xf32>
    %106 = tpu.reciprocal %105 : vector<4x16x1xf32> -> vector<4x16x1xf32>
    %107 = vector.broadcast %106 : vector<4x16x1xf32> to vector<4x16x16xf32>
    %108 = arith.mulf %102, %107 : vector<4x16x16xf32>
    %cst_30 = arith.constant 1.000000e-30 : f32
    %109 = vector.broadcast %cst_30 : f32 to vector<4x16x1xf32>
    %110 = arith.maximumf %101, %109 : vector<4x16x1xf32>
    %111 = tpu.reciprocal %110 : vector<4x16x1xf32> -> vector<4x16x1xf32>
    %112 = vector.broadcast %111 : vector<4x16x1xf32> to vector<4x16x16xf32>
    %113 = arith.mulf %103, %112 : vector<4x16x16xf32>
    %114 = vector.shape_cast %108 : vector<4x16x16xf32> to vector<64x16xf32>
    %115 = vector.shape_cast %18 : vector<16xf32> to vector<1x16xf32>
    %116 = vector.broadcast %115 : vector<1x16xf32> to vector<64x16xf32>
    %117 = arith.mulf %114, %116 : vector<64x16xf32>
    %118 = arith.addf %1, %117 : vector<64x16xf32>
    %c0_31 = arith.constant 0 : index
    %c0_32 = arith.constant 0 : index
    %c0_33 = arith.constant 0 : index
    %119 = vector.load %arg6[%c0_31, %c0_32, %c0_33] : memref<1x64x16xf32, #tpu.memory_space<vmem>>, vector<1x64x16xf32>
    %120 = vector.shape_cast %119 : vector<1x64x16xf32> to vector<64x16xf32>
    %121 = vector.shape_cast %118 : vector<64x16xf32> to vector<1x64x16xf32>
    tpu.vector_store %arg6[%c0_31, %c0_32, %c0_33], %121 {strides = array<i32>} : memref<1x64x16xf32, #tpu.memory_space<vmem>>, vector<1x64x16xf32>,
    %122 = vector.shape_cast %113 : vector<4x16x16xf32> to vector<64x16xf32>
    %123 = vector.shape_cast %20 : vector<16xf32> to vector<1x16xf32>
    %124 = vector.broadcast %123 : vector<1x16xf32> to vector<64x16xf32>
    %125 = arith.mulf %122, %124 : vector<64x16xf32>
    %126 = arith.addf %3, %125 : vector<64x16xf32>
    %c0_34 = arith.constant 0 : index
    %c0_35 = arith.constant 0 : index
    %c0_36 = arith.constant 0 : index
    %127 = vector.load %arg7[%c0_34, %c0_35, %c0_36] : memref<1x64x16xf32, #tpu.memory_space<vmem>>, vector<1x64x16xf32>
    %128 = vector.shape_cast %127 : vector<1x64x16xf32> to vector<64x16xf32>
    %129 = vector.shape_cast %126 : vector<64x16xf32> to vector<1x64x16xf32>
    tpu.vector_store %arg7[%c0_34, %c0_35, %c0_36], %129 {strides = array<i32>} : memref<1x64x16xf32, #tpu.memory_space<vmem>>, vector<1x64x16xf32>,
    return
  }
  func.func @transform_0(%arg0: i32, %arg1: i32) -> (i32, i32, i32) {
    %c0_i32 = arith.constant 0 : i32
    %c0_i32_0 = arith.constant 0 : i32
    return %arg0, %arg1, %c0_i32 : i32, i32, i32
  }
  func.func @transform_1(%arg0: i32, %arg1: i32) -> (i32, i32, i32) {
    %c0_i32 = arith.constant 0 : i32
    %c0_i32_0 = arith.constant 0 : i32
    return %arg0, %arg1, %c0_i32 : i32, i32, i32
  }
  func.func @transform_2(%arg0: i32, %arg1: i32) -> (i32, i32) {
    %c0_i32 = arith.constant 0 : i32
    %c0_i32_0 = arith.constant 0 : i32
    %c0_i32_1 = arith.constant 0 : i32
    return %c0_i32, %c0_i32_0 : i32, i32
  }
  func.func @transform_3(%arg0: i32, %arg1: i32) -> (i32, i32, i32) {
    %c0_i32 = arith.constant 0 : i32
    %c0_i32_0 = arith.constant 0 : i32
    %c0_i32_1 = arith.constant 0 : i32
    %c0_i32_2 = arith.constant 0 : i32
    return %c0_i32, %c0_i32_0, %c0_i32_1 : i32, i32, i32
  }
  func.func @transform_4(%arg0: i32, %arg1: i32) -> (i32, i32, i32) {
    %c0_i32 = arith.constant 0 : i32
    %c0_i32_0 = arith.constant 0 : i32
    return %arg0, %arg1, %c0_i32 : i32, i32, i32
  }
  func.func @transform_5(%arg0: i32, %arg1: i32) -> (i32, i32, i32) {
    %c0_i32 = arith.constant 0 : i32
    %c0_i32_0 = arith.constant 0 : i32
    return %arg0, %arg1, %c0_i32 : i32, i32, i32
  }
}

</mosaic_0001>

<bundles_post_ra>
// kernel: tpu_custom_call.1
= control target key start
LH: loop header
LB: loop body
LE: loop exit
PB: predicated region body
PF: predicated region fallthrough
CT: control target
= control target key end

     0   :  { %s3336_s18 = smov 0   ;;  %s3338_s19 = smov 0   ;;  %s3972_s0 = inlined_call_operand.vmem [shape: f32[2,128,16], index: 0, kind: input, shape index: {}]   ;;  %s3973_s1 = inlined_call_operand.vmem [shape: f32[2,128,16], index: 1, kind: input, shape index: {}]   ;;  %s3974_s2 = inlined_call_operand.vmem [shape: f32[8,16], index: 2, kind: input, shape index: {}]   ;;  %s3975_s3 = inlined_call_operand.vmem [shape: f32[2,16,32], index: 3, kind: input, shape index: {}]   ;;  %s3976_s4 = inlined_call_operand.vmem [shape: f32[2,128,16], index: 4, kind: output, shape index: {0}]   ;;  %s3977_s5 = inlined_call_operand.vmem [shape: f32[2,128,16], index: 5, kind: output, shape index: {1}]  }
   0x1   :  { %s3340_s20 = smov 0   ;;  %s3342_s21 = smov 0  }
   0x2   :  { %s3344_s22 = smov 0  }
   0x3 LB: > { %s25_s23 = sadd.s32 1, %s3292_s20  ;;  %s28_s24 = sadd.s32 1, %s3296_s21  ;;  %s3300_s22 = sphi %s3344_s22, %s16_s22   ;;  %s3296_s21 = sphi %s3342_s21, %s3981_s21   ;;  %s3292_s20 = sphi %s3340_s20, %s3980_s20   ;;  %s3288_s19 = sphi %s3338_s19, %s3979_s19   ;;  %s3284_s18 = sphi %s3336_s18, %s3978_s18  }
   0x4   : > { %p26_p0 = scmp.ge.s32.totalorder %s25_s23, 2  ;;  %p2819_p1 = scmp.ge.s32.totalorder %s3300_s22, 1 }
   0x5   : > { %p230_p2 = scmp.lt.s32.totalorder %s3300_s22, 5 }
   0x6   : > { %s3983_s23 = smov (%p26_p0, %s25_s23), 0  ;;  %s3985_s24 = smov (!%p26_p0, %s28_s24), %s3296_s21 }
   0x7   : > { %p231_p3 = pnand %p2819_p1, %p230_p2  ;;  %p30_p4 = scmp.ge.s32.totalorder %s3985_s24, 2 }
   0x8   : > { %s2820_s6 = sshll.u32 (!%p231_p3), %s3284_s18, 3  ;;  %p285_p5 = scmp.lt.s32.totalorder (!%p231_p3), %s3288_s19, 1 }
   0x9   : > { %s3987_s24 = smov (%p30_p4, %s3985_s24), 0  ;;  %234 = sbr.rel (%p231_p3) target bundleno = 1127 (0x467), region = 36 }
   0xa   : > { %p287_p6 = scmp.lt.s32.totalorder (!%p231_p3), %s2820_s6, 15  ;;  %s3302_s25 = smov (!%p231_p3), 16  }
   0xb   : > { %s3303_s26 = smov (!%p231_p3), 112  }
   0xe   : > { %v342_v0 = vld [vmem:[%s3975_s3 + $0x8] sm:$0xff]  ;;  %v344_v1 = vld [vmem:[%s3975_s3 + $0x18] sm:$0xff]  ;;  %v341_v2 = vld [vmem:[%s3975_s3] sm:$0xff]  ;;  %s3989_s19 = smov (!%p285_p5, %s3288_s19), 1  ;;  %s3991_s6 = smov (!%p287_p6, %s2820_s6), 15  ;;  %vm345_vm0 = vcmask 130048  }
   0xf   : > { %2974 = vmatprep.subr.mxu0 %v342_v0  ;;  %2990 = vmatprep.subr.mxu1 %v344_v1  ;;  %v343_v3 = vld [vmem:[%s3975_s3 + $0x10] sm:$0xff]  ;;  %s2821_s9 = sshll.u32 %s3989_s19, 4 }
  0x10   : > { %2975 = vmatpush3.msra.mxu0 %v342_v0  ;;  %2991 = vmatpush3.msra.mxu1 %v344_v1  ;;  %s290_s10 = sadd.s32 %s2821_s9, %s3991_s6 }
  0x11   : > { %2976 = vmatprep.subr.mxu0 %v341_v2  ;;  %2992 = vmatprep.subr.mxu1 %v343_v3  ;;  %s3381_s11 = sshll.u32 %s290_s10, 3 }
  0x12   : > { %2977 = vmatpush3.msra.mxu0 %v341_v2  ;;  %2993 = vmatpush3.msra.mxu1 %v343_v3  ;;  %s3387_s14 = scalar_lea.vmem %s3972_s0, %s3381_s11  ;;  %s3393_s17 = scalar_lea.vmem %s3973_s1, %s3381_s11 }
  0x13   : > { %v3396_v4 = vld [vmem:[%s3387_s14] sm:$0xff]  ;;  %v334_v6 = vld [vmem:[%s3393_s17 + $0x10] sm:$0xff]  ;;  %v333_v8 = vld [vmem:[%s3393_s17 + $0x8] sm:$0xff]  ;;  %s3890_s29 = scalar_lea.vmem %s3976_s4, %s3381_s11  ;;  %s3931_s9 = scalar_lea.vmem %s3977_s5, %s3381_s11 }
  0x14   : > { %v332_v5 = vld [vmem:[%s3393_s17] sm:$0xff]  ;;  %2978 = vmatprep.mubr.msk.f32.mxu0 %vm345_vm0, %v3396_v4  ;;  %v642_v7 = vsel %vm345_vm0, %v334_v6, 0.0  ;;  %v3406_v9 = vld [vmem:[%s3387_s14 + $0x8] sm:$0xff]  ;;  %v326_v10 = vld [vmem:[%s3387_s14 + $0x10] sm:$0xff]  ;;  %v639_v11 = vsel %vm345_vm0, %v333_v8, 0.0  ;;  %v669_v12 = vmul.f32 %v333_v8, %v333_v8  ;;  %v670_v22 = vmul.f32 %v334_v6, %v334_v6 }
  0x15   : > { %2994 = vmatprep.mubr.msk.f32.mxu1 %vm345_vm0, %v332_v5  ;;  %643 = vadd.xlane.f32.xlu1 %v642_v7  ;;  %v335_v13 = vld [vmem:[%s3393_s17 + $0x18] sm:$0xff]  ;;  %v3420_v18 = vld [vmem:[%s3387_s14 + $0x20] sm:$0xff]  ;;  %v3427_v21 = vld [vmem:[%s3387_s14 + $0x28] sm:$0xff]  ;;  %v636_v24 = vsel %vm345_vm0, %v332_v5, 0.0  ;;  %v668_v25 = vmul.f32 %v332_v5, %v332_v5  ;;  %v352_v32 = vsel %vm345_vm0, %v326_v10, 0.0  ;;  %v346_v33 = vsel %vm345_vm0, %v3396_v4, 0.0 }
  0x16   : > { %2979 = vmatmul.mubr.msk.f32.vlgmr.msra.gmra.mxu0 %vm345_vm0, %v3406_v9  ;;  %640 = vadd.xlane.f32.xlu0 %v639_v11  ;;  %v327_v14 = vld [vmem:[%s3387_s14 + $0x18] sm:$0xff]  ;;  %v671_v15 = vmul.f32 %v335_v13, %v335_v13  ;;  %v679_v16 = vsel %vm345_vm0, %v669_v12, 0.0  ;;  %v645_v17 = vsel %vm345_vm0, %v335_v13, 0.0  ;;  %v336_v19 = vld [vmem:[%s3393_s17 + $0x20] sm:$0xff]  ;;  %v337_v23 = vld [vmem:[%s3393_s17 + $0x28] sm:$0xff]  ;;  %v682_v28 = vsel %vm345_vm0, %v670_v22, 0.0 }
  0x17   : > { %2995 = vmatmul.mubr.msk.f32.vlgmr.msra.gmra.mxu1 %vm345_vm0, %v333_v8  ;;  %2981 = vmatprep.mubr.msk.f32.mxu0 %vm345_vm0, %v326_v10  ;;  %v330_v26 = vld [vmem:[%s3387_s14 + $0x30] sm:$0xff]  ;;  %v331_v29 = vld [vmem:[%s3387_s14 + $0x38] sm:$0xff]  ;;  %v676_v31 = vsel %vm345_vm0, %v668_v25, 0.0  ;;  %v651_v35 = vsel %vm345_vm0, %v337_v23, 0.0  ;;  %v355_v36 = vsel %vm345_vm0, %v327_v14, 0.0  ;;  %v381_v37 = vmul.f32 %v326_v10, %v326_v10 }
  0x18   : > { %2997 = vmatprep.mubr.msk.f32.mxu1 %vm345_vm0, %v334_v6  ;;  %v685_v20 = vsel %vm345_vm0, %v671_v15, 0.0  ;;  %v338_v27 = vld [vmem:[%s3393_s17 + $0x30] sm:$0xff]  ;;  %v339_v30 = vld [vmem:[%s3393_s17 + $0x38] sm:$0xff]  ;;  %v349_v38 = vsel %vm345_vm0, %v3406_v9, 0.0  ;;  %v379_v39 = vmul.f32 %v3396_v4, %v3396_v4  ;;  %v673_v43 = vmul.f32 %v337_v23, %v337_v23 }
  0x19   : > { %680 = vadd.xlane.f32.xlu1 %v679_v16  ;;  %v657_v34 = vsel %vm345_vm0, %v339_v30, 0.0  ;;  %v393_v40 = vsel %vm345_vm0, %v381_v37, 0.0  ;;  %v675_v41 = vmul.f32 %v339_v30, %v339_v30  ;;  %v382_v45 = vmul.f32 %v327_v14, %v327_v14 }
  0x1a   : > { %2982 = vmatmul.mubr.msk.f32.gmra.mxu0 %vm345_vm0, %v327_v14  ;;  %646 = vadd.xlane.f32.xlu0 %v645_v17  ;;  %v387_v42 = vsel %vm345_vm0, %v379_v39, 0.0  ;;  %v691_v46 = vsel %vm345_vm0, %v673_v43, 0.0  ;;  %v380_v47 = vmul.f32 %v3406_v9, %v3406_v9  ;;  %v654_v50 = vsel %vm345_vm0, %v338_v27, 0.0 }
  0x1b   : > { %2998 = vmatmul.mubr.msk.f32.gmra.mxu1 %vm345_vm0, %v335_v13  ;;  %2984 = vmatprep.mubr.msk.f32.mxu0 %vm345_vm0, %v3420_v18  ;;  %v697_v44 = vsel %vm345_vm0, %v675_v41, 0.0  ;;  %v396_v48 = vsel %vm345_vm0, %v382_v45, 0.0  ;;  %v674_v51 = vmul.f32 %v338_v27, %v338_v27  ;;  %v648_v52 = vsel %vm345_vm0, %v336_v19, 0.0 }
  0x1c   : > { %3000 = vmatprep.mubr.msk.f32.mxu1 %vm345_vm0, %v336_v19  ;;  %v390_v49 = vsel %vm345_vm0, %v380_v47, 0.0  ;;  %v672_v53 = vmul.f32 %v336_v19, %v336_v19  ;;  %v364_v56 = vsel %vm345_vm0, %v330_v26, 0.0  ;;  %v358_v57 = vsel %vm345_vm0, %v3420_v18, 0.0 }
  0x1d   : > { %686 = vadd.xlane.f32.xlu1 %v685_v20  ;;  %v694_v54 = vsel %vm345_vm0, %v674_v51, 0.0  ;;  %v367_v58 = vsel %vm345_vm0, %v331_v29, 0.0  ;;  %v385_v59 = vmul.f32 %v330_v26, %v330_v26  ;;  %v361_v60 = vsel %vm345_vm0, %v3427_v21, 0.0 }
  0x1e   : > { %2985 = vmatmul.mubr.msk.f32.gmra.mxu0 %vm345_vm0, %v3427_v21  ;;  %637 = vadd.xlane.f32.xlu0 %v636_v24  ;;  %v688_v55 = vsel %vm345_vm0, %v672_v53, 0.0  ;;  %v383_v61 = vmul.f32 %v3420_v18, %v3420_v18  ;;  %v386_v63 = vmul.f32 %v331_v29, %v331_v29  ;;  %v384_v1 = vmul.f32 %v3427_v21, %v3427_v21 }
  0x1f   : > { %3001 = vmatmul.mubr.msk.f32.gmra.mxu1 %vm345_vm0, %v337_v23  ;;  %2987 = vmatprep.mubr.msk.f32.mxu0 %vm345_vm0, %v330_v26  ;;  %v405_v62 = vsel %vm345_vm0, %v385_v59, 0.0  ;;  %v580_v18 = vlaneseq }
  0x20   : > { %3003 = vmatprep.mubr.msk.f32.mxu1 %vm345_vm0, %v338_v27  ;;  %v399_v0 = vsel %vm345_vm0, %v383_v61, 0.0  ;;  %v408_v2 = vsel %vm345_vm0, %v386_v63, 0.0  ;;  %v402_v3 = vsel %vm345_vm0, %v384_v1, 0.0 }
  0x21   : > { %683 = vadd.xlane.f32.xlu1 %v682_v28  ;;  %v3487_v24 = vshrl.u32 %v580_v18, 7 }
  0x22   : > { %2988 = vmatmul.mubr.msk.f32.gmra.mxu0 %vm345_vm0, %v331_v29  ;;  %677 = vadd.xlane.f32.xlu0 %v676_v31 }
  0x23   : > { %3004 = vmatmul.mubr.msk.f32.gmra.mxu1 %vm345_vm0, %v339_v30 }
  0x25   : > { %353 = vadd.xlane.f32.xlu1 %v352_v32 }
  0x26   : > { %347 = vadd.xlane.f32.xlu0 %v346_v33 }
  0x29   : > { %658 = vadd.xlane.f32.xlu1 %v657_v34 }
  0x2a   : > { %652 = vadd.xlane.f32.xlu0 %v651_v35 }
  0x2d   : > { %356 = vadd.xlane.f32.xlu1 %v355_v36  ;;  %v871_v36 = vsub.s32 3, %v3487_v24 }
  0x2e   : > { %350 = vadd.xlane.f32.xlu0 %v349_v38  ;;  %v582_v38 = vsub.s32 0, %v3487_v24 }
  0x31   : > { %394 = vadd.xlane.f32.xlu1 %v393_v40 }
  0x32   : > { %388 = vadd.xlane.f32.xlu0 %v387_v42 }
  0x35   : > { %698 = vadd.xlane.f32.xlu1 %v697_v44  ;;  %v610_v44 = vsub.s32 1, %v3487_v24 }
  0x36   : > { %692 = vadd.xlane.f32.xlu0 %v691_v46 }
  0x39   : > { %397 = vadd.xlane.f32.xlu1 %v396_v48 }
  0x3a   : > { %391 = vadd.xlane.f32.xlu0 %v390_v49 }
  0x3d   : > { %655 = vadd.xlane.f32.xlu1 %v654_v50 }
  0x3e   : > { %649 = vadd.xlane.f32.xlu0 %v648_v52 }
  0x41   : > { %695 = vadd.xlane.f32.xlu1 %v694_v54 }
  0x42   : > { %689 = vadd.xlane.f32.xlu0 %v688_v55 }
  0x45   : > { %365 = vadd.xlane.f32.xlu1 %v364_v56 }
  0x46   : > { %359 = vadd.xlane.f32.xlu0 %v358_v57 }
  0x49   : > { %368 = vadd.xlane.f32.xlu1 %v367_v58 }
  0x4a   : > { %362 = vadd.xlane.f32.xlu0 %v361_v60 }
  0x4d   : > { %406 = vadd.xlane.f32.xlu1 %v405_v62  ;;  %v899_v62 = vsub.s32 4, %v3487_v24 }
  0x4e   : > { %400 = vadd.xlane.f32.xlu0 %v399_v0 }
  0x51   : > { %409 = vadd.xlane.f32.xlu1 %v408_v2 }
  0x52   : > { %403 = vadd.xlane.f32.xlu0 %v402_v3 }
  0x9e   : > { %v644_v4 = vpop.xlane.xlu1 %643 }
  0x9f   : > { %v641_v5 = vpop.xlane.xlu0 %640  ;;  %v3497_v32 = vmul.f32 0.0625, %v644_v4 }
  0xa0   : > { %v3483_v20 = vmul.f32 0.0625, %v641_v5 }
  0xa1   : > { %v710_v49 = vmul.f32 %v3497_v32, %v3497_v32 }
  0xa2   : > { %v681_v6 = vpop.xlane.xlu1 %680  ;;  %v709_v26 = vmul.f32 %v3483_v20, %v3483_v20 }
  0xa3   : > { %v647_v7 = vpop.xlane.xlu0 %646  ;;  %v701_v22 = vmul.f32 0.0625, %v681_v6 }
  0xa4   : > { %v3493_v30 = vmul.f32 0.0625, %v647_v7 }
  0xa5   : > { %v717_v33 = vsub.f32 %v701_v22, %v709_v26 }
  0xa6   : > { %v687_v8 = vpop.xlane.xlu1 %686  ;;  %v711_v45 = vmul.f32 %v3493_v30, %v3493_v30 }
  0xa7   : > { %v638_v9 = vpop.xlane.xlu0 %637  ;;  %v703_v37 = vmul.f32 0.0625, %v687_v8  ;;  %v725_v50 = vadd.f32 1e-06, %v717_v33 }
  0xa8   : > { %v3491_v27 = vmul.f32 0.0625, %v638_v9 }
  0xa9   : > { %v719_v53 = vsub.f32 %v703_v37, %v711_v45  ;;  %3165 = vrsqrt.f32 %v725_v50 }
  0xaa   : > { %v684_v10 = vpop.xlane.xlu1 %683  ;;  %v708_v40 = vmul.f32 %v3491_v27, %v3491_v27 }
  0xab   : > { %v678_v11 = vpop.xlane.xlu0 %677  ;;  %v702_v41 = vmul.f32 0.0625, %v684_v10  ;;  %v727_v7 = vadd.f32 1e-06, %v719_v53 }
  0xac   : > { %v700_v34 = vmul.f32 0.0625, %v678_v11  ;;  %v3532_v11 = vld [vmem:[%s3974_s2] sm:$0xff] }
  0xad   : > { %v718_v58 = vsub.f32 %v702_v41, %v710_v49  ;;  %v3539_v26 = vrot.slane %v3532_v11, %v871_v36  ;;  %v3542_v37 = vrot.slane %v3532_v11, %v582_v38  ;;  %v3548_v36 = vrot.slane %v3532_v11, %v899_v62 }
  0xae   : > { %v354_v12 = vpop.xlane.xlu1 %353  ;;  %v716_v51 = vsub.f32 %v700_v34, %v708_v40  ;;  %v3545_v40 = vrot.slane %v3532_v11, %v610_v44 }
  0xaf   : > { %v348_v13 = vpop.xlane.xlu0 %347  ;;  %v3508_v46 = vmul.f32 0.0625, %v354_v12  ;;  %v726_v12 = vadd.f32 1e-06, %v718_v58  ;;  %v874_v45 = vmul.f32 %v3539_v26, %v3483_v20  ;;  %v3558_v38 = vmul.f32 %v3539_v26, %v3493_v30 }
  0xb0   : > { %v3485_v23 = vmul.f32 0.0625, %v348_v13  ;;  %v724_v3 = vadd.f32 1e-06, %v716_v51 }
  0xb1   : > { %v421_v63 = vmul.f32 %v3508_v46, %v3508_v46 }
  0xb2   : > { %v659_v14 = vpop.xlane.xlu1 %658  ;;  %v419_v35 = vmul.f32 %v3485_v23, %v3485_v23  ;;  %v584_v20 = vmul.f32 %v3542_v37, %v3485_v23 }
  0xb3   : > { %v653_v15 = vpop.xlane.xlu0 %652  ;;  %v667_v4 = vmul.f32 0.0625, %v659_v14 }
  0xb4   : > { %v3514_v52 = vmul.f32 0.0625, %v653_v15 }
  0xb5   : > { %v3573_v51 = vmul.f32 %v3539_v26, %v667_v4 }
  0xb6   : > { %v357_v16 = vpop.xlane.xlu1 %356  ;;  %v713_v5 = vmul.f32 %v3514_v52, %v3514_v52 }
  0xb7   : > { %v351_v17 = vpop.xlane.xlu0 %350  ;;  %v3516_v54 = vmul.f32 0.0625, %v357_v16 }
  0xb8   : > { %v3495_v31 = vmul.f32 0.0625, %v351_v17 }
  0xb9   : > { %v422_v8 = vmul.f32 %v3516_v54, %v3516_v54 }
  0xba   : > { %v395_v19 = vpop.xlane.xlu1 %394  ;;  %v420_v47 = vmul.f32 %v3495_v31, %v3495_v31  ;;  %v585_v23 = vmul.f32 %v3542_v37, %v3495_v31 }
  0xbb   : > { %v389_v21 = vpop.xlane.xlu0 %388  ;;  %v413_v55 = vmul.f32 0.0625, %v395_v19  ;;  %v715_v19 = vmul.f32 %v667_v4, %v667_v4 }
  0xbc   : > { %v411_v28 = vmul.f32 0.0625, %v389_v21 }
  0xbd   : > { %v429_v9 = vsub.f32 %v413_v55, %v421_v63 }
  0xbe   : > { %v699_v25 = vpop.xlane.xlu1 %698  ;;  %v427_v42 = vsub.f32 %v411_v28, %v419_v35 }
  0xbf   : > { %v693_v29 = vpop.xlane.xlu0 %692  ;;  %v707_v13 = vmul.f32 0.0625, %v699_v25  ;;  %v437_v28 = vadd.f32 1e-06, %v429_v9 }
  0xc0   : > { %v435_v59 = vadd.f32 1e-06, %v427_v42  ;;  %v705_v60 = vmul.f32 0.0625, %v693_v29 }
  0xc1   : > { %v723_v33 = vsub.f32 %v707_v13, %v715_v19 }
  0xc2   : > { %v398_v39 = vpop.xlane.xlu1 %397  ;;  %3167 = vrsqrt.f32 %v435_v59  ;;  %v721_v14 = vsub.f32 %v705_v60, %v713_v5 }
  0xc3   : > { %v392_v43 = vpop.xlane.xlu0 %391  ;;  %v414_v0 = vmul.f32 0.0625, %v398_v39 }
  0xc4   : > { %v412_v48 = vmul.f32 0.0625, %v392_v43  ;;  %v729_v34 = vadd.f32 1e-06, %v721_v14  ;;  %v3552_v43 = vmul.f32 %v3539_v26, %v3497_v32  ;;  %v3566_v32 = vmul.f32 %v3542_v37, %v3508_v46 }
  0xc5   : > { %v430_v16 = vsub.f32 %v414_v0, %v422_v8  ;;  %v3583_v46 = vmul.f32 %v3542_v37, %v3516_v54 }
  0xc6   : > { %v428_v56 = vsub.f32 %v412_v48, %v420_v47  ;;  %v656_v57 = vpop.xlane.xlu1 %655  ;;  %v873_v47 = vmul.f32 %v3539_v26, %v3491_v27  ;;  %v731_v48 = vadd.f32 1e-06, %v723_v33  ;;  %v3577_v27 = vmul.f32 %v3539_v26, %v3514_v52  ;;  %v3166_v52 = vpop.eup %3165 }
  0xc7   : > { %v650_v61 = vpop.xlane.xlu0 %649  ;;  %v3525_v6 = vmul.f32 0.0625, %v656_v57  ;;  %v438_v39 = vadd.f32 1e-06, %v430_v16 }
  0xc8   : > { %v436_v1 = vadd.f32 1e-06, %v428_v56  ;;  %v3521_v2 = vmul.f32 0.0625, %v650_v61 }
  0xc9   : > { %v714_v21 = vmul.f32 %v3525_v6, %v3525_v6 }
  0xca   : > { %v696_v10 = vpop.xlane.xlu1 %695  ;;  %3169 = vrsqrt.f32 %v436_v1  ;;  %v712_v17 = vmul.f32 %v3521_v2, %v3521_v2 }
  0xcb   : > { %v690_v15 = vpop.xlane.xlu0 %689  ;;  %3171 = vrsqrt.f32 %v724_v3  ;;  %v706_v22 = vmul.f32 0.0625, %v696_v10 }
  0xcc   : > { %v704_v18 = vmul.f32 0.0625, %v690_v15  ;;  %3173 = vrsqrt.f32 %v727_v7 }
  0xcd   : > { %3175 = vrsqrt.f32 %v726_v12  ;;  %v722_v41 = vsub.f32 %v706_v22, %v714_v21 }
  0xce   : > { %v720_v29 = vsub.f32 %v704_v18, %v712_v17  ;;  %v366_v25 = vpop.xlane.xlu1 %365  ;;  %3177 = vrsqrt.f32 %v437_v28 }
  0xcf   : > { %v360_v35 = vpop.xlane.xlu0 %359  ;;  %3179 = vrsqrt.f32 %v729_v34  ;;  %v3562_v49 = vmul.f32 0.0625, %v366_v25  ;;  %v730_v53 = vadd.f32 1e-06, %v722_v41  ;;  %v3168_v0 = vpop.eup %3167 }
  0xd0   : > { %v728_v42 = vadd.f32 1e-06, %v720_v29  ;;  %3181 = vrsqrt.f32 %v438_v39  ;;  %v3570_v30 = vmul.f32 0.0625, %v360_v35 }
  0xd1   : > { %v425_v60 = vmul.f32 %v3562_v49, %v3562_v49 }
  0xd2   : > { %v369_v44 = vpop.xlane.xlu1 %368  ;;  %3183 = vrsqrt.f32 %v728_v42  ;;  %v423_v31 = vmul.f32 %v3570_v30, %v3570_v30 }
  0xd3   : > { %v363_v50 = vpop.xlane.xlu0 %362  ;;  %v3587_v56 = vmul.f32 0.0625, %v369_v44  ;;  %3185 = vrsqrt.f32 %v731_v48 }
  0xd4   : > { %v3589_v57 = vmul.f32 0.0625, %v363_v50  ;;  %3187 = vrsqrt.f32 %v730_v53 }
  0xd5   : > { %v426_v14 = vmul.f32 %v3587_v56, %v3587_v56 }
  0xd6   : > { %v3579_v55 = vpop.f32.mrf.mxu0  ;;  %v407_v59 = vpop.xlane.xlu1 %406  ;;  %v424_v15 = vmul.f32 %v3589_v57, %v3589_v57 }
  0xd7   : > { %v3591_v58 = vpop.f32.mrf.mxu1  ;;  %v417_v62 = vmul.f32 0.0625, %v407_v59  ;;  %v401_v54 = vpop.xlane.xlu0 %400  ;;  %v593_v1 = vsub.f32 %v3579_v55, %v585_v23 }
  0xd8   : > { %v882_v61 = vsub.f32 %v3591_v58, %v874_v45  ;;  %v3596_v63 = vpop.f32.mrf.mxu0  ;;  %v415_v3 = vmul.f32 0.0625, %v401_v54  ;;  %v3170_v7 = vpop.eup %3169 }
  0xd9   : > { %v592_v4 = vsub.f32 %v3596_v63, %v584_v20  ;;  %v3602_v5 = vpop.f32.mrf.mxu1  ;;  %v433_v9 = vsub.f32 %v417_v62, %v425_v60  ;;  %v3172_v13 = vpop.eup %3171  ;;  %v601_v35 = vmul.f32 %v3170_v7, %v593_v1  ;;  %v877_v60 = vmul.f32 %v3539_v26, %v3521_v2 }
  0xda   : > { %v890_v8 = vmul.f32 %v3166_v52, %v882_v61  ;;  %v881_v10 = vsub.f32 %v3602_v5, %v873_v47  ;;  %v3605_v12 = vpop.f32.mrf.mxu0  ;;  %v431_v16 = vsub.f32 %v415_v3, %v423_v31  ;;  %v410_v19 = vpop.xlane.xlu1 %409 }
  0xdb   : > { %v600_v17 = vmul.f32 %v3168_v0, %v592_v4  ;;  %v3611_v18 = vpop.f32.mrf.mxu1  ;;  %v441_v22 = vadd.f32 1e-06, %v433_v9  ;;  %v404_v25 = vpop.xlane.xlu0 %403  ;;  %v418_v42 = vmul.f32 0.0625, %v410_v19  ;;  %v595_v20 = vsub.f32 %v3605_v12, %v3583_v46 }
  0xdc   : > { %v902_v21 = vadd.f32 %v3548_v36, %v890_v8  ;;  %v889_v28 = vmul.f32 %v3172_v13, %v881_v10  ;;  %v884_v29 = vsub.f32 %v3611_v18, %v3558_v38  ;;  %v3616_v33 = vpop.f32.mrf.mxu0  ;;  %v3174_v34 = vpop.eup %3173  ;;  %v439_v39 = vadd.f32 1e-06, %v431_v16 }
  0xdd   : > { %v612_v41 = vadd.f32 %v3545_v40, %v600_v17  ;;  %v3619_v45 = vpop.f32.mrf.mxu1  ;;  %3189 = vrsqrt.f32 %v441_v22  ;;  %v416_v48 = vmul.f32 0.0625, %v404_v25  ;;  %v3176_v38 = vpop.eup %3175  ;;  %v434_v53 = vsub.f32 %v418_v42, %v426_v14 }
  0xde   : > { %v901_v44 = vadd.f32 %v3548_v36, %v889_v28  ;;  %v892_v47 = vmul.f32 %v3174_v34, %v884_v29  ;;  %3006 = vmatprep.subr.msk.mxu0 %vm345_vm0, %v902_v21  ;;  %v3623_v50 = vpop.f32.mrf.mxu0  ;;  %3191 = vrsqrt.f32 %v439_v39  ;;  %v594_v23 = vsub.f32 %v3616_v33, %v3566_v32  ;;  %v3178_v52 = vpop.eup %3177 }
  0xdf   : > { %v3629_v59 = vpop.f32.mrf.mxu1  ;;  %3007 = vmatpush3.xpose.msk.msra.mxu0 %vm345_vm0, %v902_v21  ;;  %3010 = vmatprep.mubr.msk.f32.mxu0 %vm345_vm0, %v612_v41  ;;  %v432_v62 = vsub.f32 %v416_v48, %v424_v15  ;;  %v883_v46 = vsub.f32 %v3619_v45, %v3552_v43  ;;  %v3180_v32 = vpop.eup %3179  ;;  %v879_v0 = vmul.f32 %v3539_v26, %v3525_v6  ;;  %v442_v31 = vadd.f32 1e-06, %v434_v53 }
  0xe0   : > { %v904_v61 = vadd.f32 %v3548_v36, %v892_v47  ;;  %3008 = vmatprep.subr.msk.mxu0 %vm345_vm0, %v901_v44  ;;  %v3639_v54 = vpop.f32.mrf.mxu0  ;;  %v602_v1 = vmul.f32 %v3178_v52, %v594_v23  ;;  %v886_v3 = vsub.f32 %v3629_v59, %v3577_v27  ;;  %v3182_v4 = vpop.eup %3181  ;;  %v613_v7 = vadd.f32 %v3545_v40, %v601_v35 }
  0xe1   : > { %v3645_v2 = vpop.f32.mrf.mxu1  ;;  %v440_v8 = vadd.f32 1e-06, %v432_v62  ;;  %v891_v43 = vmul.f32 %v3176_v38, %v883_v46  ;;  %v3184_v10 = vpop.eup %3183  ;;  %v603_v13 = vmul.f32 %v3182_v4, %v595_v20  ;;  %3193 = vrsqrt.f32 %v442_v31 }
  0xe2   : > { %v885_v9 = vsub.f32 %v3645_v2, %v877_v60  ;;  %3013 = vmatprep.subr.msk.mxu1 %vm345_vm0, %v904_v61  ;;  %v614_v6 = vadd.f32 %v3545_v40, %v602_v1  ;;  %v894_v26 = vmul.f32 %v3180_v32, %v886_v3  ;;  %v3651_v14 = vpop.f32.mrf.mxu0  ;;  %v3186_v19 = vpop.eup %3185 }
  0xe3   : > { %v3653_v27 = vpop.f32.mrf.mxu1  ;;  %3009 = vmatpush3.xpose.msk.msra.mxu0 %vm345_vm0, %v901_v44  ;;  %3014 = vmatpush3.xpose.msk.msra.mxu1 %vm345_vm0, %v904_v61  ;;  %3195 = vrsqrt.f32 %v440_v8  ;;  %v903_v15 = vadd.f32 %v3548_v36, %v891_v43  ;;  %v3188_v34 = vpop.eup %3187  ;;  %v615_v39 = vadd.f32 %v3545_v40, %v603_v13  ;;  %v588_v44 = vmul.f32 %v3542_v37, %v3570_v30 }
  0xe4   : > { %v893_v16 = vmul.f32 %v3184_v10, %v885_v9  ;;  %v888_v17 = vsub.f32 %v3653_v27, %v3573_v51  ;;  %v906_v21 = vadd.f32 %v3548_v36, %v894_v26  ;;  %3017 = vmatprep.mubr.msk.f32.mxu1 %vm345_vm0, %v614_v6  ;;  %v3668_v35 = vpop.f32.mrf.mxu0  ;;  %v590_v51 = vmul.f32 %v3542_v37, %v3562_v49 }
  0xe5   : > { %v3662_v22 = vpop.f32.mrf.mxu1  ;;  %3015 = vmatprep.subr.msk.mxu1 %vm345_vm0, %v903_v15  ;;  %v596_v38 = vsub.f32 %v3639_v54, %v588_v44  ;;  %v591_v30 = vmul.f32 %v3542_v37, %v3587_v56 }
  0xe6   : > { %v905_v28 = vadd.f32 %v3548_v36, %v893_v16  ;;  %v896_v29 = vmul.f32 %v3186_v19, %v888_v17  ;;  %v887_v25 = vsub.f32 %v3662_v22, %v879_v0  ;;  %3011 = vmatmul.mubr.msk.f32.vlgmr.msra.gmra.mxu0 %vm345_vm0, %v613_v7  ;;  %3020 = vmatprep.subr.msk.mxu0 %vm345_vm0, %v906_v21  ;;  %v622_v19 = vsub.s32 2, %v3487_v24 }
  0xe7   : > { %3016 = vmatpush3.xpose.msk.msra.mxu1 %vm345_vm0, %v903_v15  ;;  %3021 = vmatpush3.xpose.msk.msra.mxu0 %vm345_vm0, %v906_v21  ;;  %v598_v47 = vsub.f32 %v3668_v35, %v590_v51  ;;  %v599_v61 = vsub.f32 %v3651_v14, %v591_v30 }
  0xe8   : > { %v908_v41 = vadd.f32 %v3548_v36, %v896_v29  ;;  %v895_v42 = vmul.f32 %v3188_v34, %v887_v25  ;;  %3022 = vmatprep.subr.msk.mxu0 %vm345_vm0, %v905_v28  ;;  %v623_v21 = vrot.slane %v3532_v11, %v622_v19 }
  0xea   : > { %v907_v48 = vadd.f32 %v3548_v36, %v895_v42  ;;  %3018 = vmatmul.mubr.msk.f32.vlgmr.msra.gmra.mxu1 %vm345_vm0, %v615_v39  ;;  %3027 = vmatprep.subr.msk.mxu1 %vm345_vm0, %v908_v41  ;;  %v3190_v49 = vpop.eup %3189  ;;  %v589_v36 = vmul.f32 %v3542_v37, %v3589_v57 }
  0xeb   : > { %3028 = vmatpush3.xpose.msk.msra.mxu1 %vm345_vm0, %v908_v41  ;;  %v3192_v20 = vpop.eup %3191  ;;  %v606_v53 = vmul.f32 %v3190_v49, %v598_v47  ;;  %3023 = vmatpush3.xpose.msk.msra.mxu0 %vm345_vm0, %v905_v28  ;;  %v911_v28 = vsub.s32 5, %v3487_v24 }
  0xec   : > { %3029 = vmatprep.subr.msk.mxu1 %vm345_vm0, %v907_v48  ;;  %v604_v23 = vmul.f32 %v3192_v20, %v596_v38  ;;  %v597_v46 = vsub.f32 %v3623_v50, %v589_v36 }
  0xed   : > { %v618_v52 = vadd.f32 %v3545_v40, %v606_v53  ;;  %v912_v29 = vrot.slane %v3532_v11, %v911_v28 }
  0xee   : > { %v616_v60 = vadd.f32 %v3545_v40, %v604_v23  ;;  %v3194_v62 = vpop.eup %3193 }
  0xef   : > { %3030 = vmatpush3.xpose.msk.msra.mxu1 %vm345_vm0, %v907_v48  ;;  %3031 = vmatprep.mubr.msk.f32.mxu1 %vm345_vm0, %v618_v52  ;;  %v607_v0 = vmul.f32 %v3194_v62, %v599_v61 }
  0xf0   : > { %v3196_v32 = vpop.eup %3195  ;;  %3024 = vmatprep.mubr.msk.f32.mxu0 %vm345_vm0, %v616_v60 }
  0xf1   : > { %v605_v56 = vmul.f32 %v3196_v32, %v597_v46  ;;  %v619_v37 = vadd.f32 %v3545_v40, %v607_v0 }
  0xf3   : > { %v617_v57 = vadd.f32 %v3545_v40, %v605_v56  ;;  %3032 = vmatmul.mubr.msk.f32.vlgmr.msra.gmra.mxu1 %vm345_vm0, %v619_v37 }
  0xf5   : > { %3025 = vmatmul.mubr.msk.f32.vlgmr.msra.gmra.mxu0 %vm345_vm0, %v617_v57 }
 0x1a6   : > { %v3703_v31 = vpop.f32.mrf.mxu0 }
 0x1a7   : > { %v1276_v1 = vsel %vm345_vm0, %v3703_v31, -inf }
 0x1a8   : > { %1277 = vmax.xlane.f32.xlu1 %v1276_v1  ;;  %v3707_v3 = vpop.f32.mrf.mxu0 }
 0x1a9   : > { %v1273_v4 = vsel %vm345_vm0, %v3707_v3, -inf }
 0x1aa   : > { %v3711_v7 = vpop.f32.mrf.mxu1  ;;  %1274 = vmax.xlane.f32.xlu0 %v1273_v4 }
 0x1ab   : > { %v1282_v40 = vsel %vm345_vm0, %v3711_v7, -inf }
 0x1ac   : > { %v1090_v8 = vpop.f32.mrf.mxu1  ;;  %1283 = vmax.xlane.f32.xlu1 %v1282_v40 }
 0x1ad   : > { %v1279_v43 = vsel %vm345_vm0, %v1090_v8, -inf }
 0x1ae   : > { %1280 = vmax.xlane.f32.xlu0 %v1279_v43 }
 0x1b3   : > { %v3718_v10 = vpop.f32.mrf.mxu1 }
 0x1b4   : > { %v1294_v16 = vsel %vm345_vm0, %v3718_v10, -inf }
 0x1b5   : > { %v3716_v9 = vpop.f32.mrf.mxu0  ;;  %v3726_v15 = vpop.f32.mrf.mxu1 }
 0x1b6   : > { %v1288_v13 = vsel %vm345_vm0, %v3716_v9, -inf  ;;  %v1291_v17 = vsel %vm345_vm0, %v3726_v15, -inf }
 0x1b7   : > { %1289 = vmax.xlane.f32.xlu1 %v1288_v13  ;;  %v3722_v6 = vpop.f32.mrf.mxu0 }
 0x1b8   : > { %v1285_v26 = vsel %vm345_vm0, %v3722_v6, -inf }
 0x1b9   : > { %1286 = vmax.xlane.f32.xlu0 %v1285_v26 }
 0x1bb   : > { %1295 = vmax.xlane.f32.xlu1 %v1294_v16 }
 0x1bd   : > { %1292 = vmax.xlane.f32.xlu0 %v1291_v17 }
 0x1cc   : > { %625 = vrot.lane.b32.xlu1 %v623_v21, %s3302_s25 }
 0x1d3   : > { %914 = vrot.lane.b32.xlu0 %v912_v29, %s3302_s25 }
 0x231   : > { %v1278_v25 = vpop.xlane.xlu1 %1277 }
 0x233   : > { %v1275_v34 = vpop.xlane.xlu0 %1274 }
 0x234   : > { %v1297_v30 = vmax.f32 %v1275_v34, %v1278_v25 }
 0x235   : > { %v1284_v39 = vpop.xlane.xlu1 %1283 }
 0x236   : > { %v1298_v62 = vrot.slane %v1297_v30, 4 }
 0x237   : > { %v1281_v51 = vpop.xlane.xlu0 %1280 }
 0x238   : > { %v1304_v41 = vmax.f32 %v1281_v51, %v1284_v39  ;;  %v1299_v37 = vmax.f32 %v1297_v30, %v1298_v62 }
 0x23a   : > { %v1305_v42 = vrot.slane %v1304_v41, 4 }
 0x23c   : > { %v1306_v44 = vmax.f32 %v1304_v41, %v1305_v42 }
 0x23e   : > { %v1307_v38 = vrot.slane %v1306_v44, 2 }
 0x240   : > { %v1290_v47 = vpop.xlane.xlu1 %1289  ;;  %v1308_v23 = vmax.f32 %v1306_v44, %v1307_v38 }
 0x242   : > { %v1287_v48 = vpop.xlane.xlu0 %1286  ;;  %v1309_v46 = vrot.slane %v1308_v23, 1 }
 0x243   : > { %v1311_v49 = vmax.f32 %v1287_v48, %v1290_v47 }
 0x244   : > { %v1296_v0 = vpop.xlane.xlu1 %1295  ;;  %v1310_v1 = vmax.f32 %v1308_v23, %v1309_v46 }
 0x245   : > { %v1312_v20 = vrot.slane %v1311_v49, 4 }
 0x246   : > { %v1293_v53 = vpop.xlane.xlu0 %1292  ;;  %v1327_v40 = vsub.f32 %v1090_v8, %v1310_v1  ;;  %v1328_v16 = vsub.f32 %v3711_v7, %v1310_v1  ;;  %v3304_v7 = vmov 1.0  }
 0x247   : > { %v1313_v36 = vmax.f32 %v1311_v49, %v1312_v20  ;;  %v1318_v57 = vmax.f32 %v1293_v53, %v1296_v0  ;;  %3041 = vmatprep.subr.mxu1 %v3304_v7  ;;  %3034 = vmatprep.subr.mxu0 %v3304_v7 }
 0x248   : > { %v1337_v17 = vmul.f32 1.442695, %v1327_v40  ;;  %3042 = vmatpush3.msra.mxu1 %v3304_v7  ;;  %3035 = vmatpush3.msra.mxu0 %v3304_v7  ;;  %v626_v46 = vpop.permute.xlu1 %625 }
 0x249   : > { %v1314_v32 = vrot.slane %v1313_v36, 2  ;;  %3043 = vmatprep.subr.mxu1 %v3304_v7  ;;  %3036 = vmatprep.subr.mxu0 %v3304_v7 }
 0x24a   : > { %v3736_v52 = vpop.permute.xlu0 %914  ;;  %3197 = vpow2.f32 %v1337_v17  ;;  %3044 = vmatpush3.msra.mxu1 %v3304_v7  ;;  %3037 = vmatpush3.msra.mxu0 %v3304_v7 }
 0x24b   : > { %v920_v60 = vadd.f32 %v3611_v18, %v3736_v52  ;;  %v918_v61 = vadd.f32 %v3591_v58, %v3736_v52  ;;  %v917_v56 = vadd.f32 %v3736_v52, %v3602_v5  ;;  %v1315_v4 = vmax.f32 %v1313_v36, %v1314_v32  ;;  %3055 = vmatprep.subr.mxu1 %v3304_v7 }
 0x24c   : > { %v1300_v18 = vrot.slane %v1299_v37, 2  ;;  %v1319_v58 = vrot.slane %v1318_v57, 4  ;;  %v1339_v5 = vmul.f32 1.442695, %v1328_v16  ;;  %3048 = vmatprep.subr.mxu0 %v3304_v7  ;;  %v919_v62 = vadd.f32 %v3736_v52, %v3619_v45 }
 0x24d   : > { %1918 = vrot.lane.b32.xlu1 %v920_v60, %s3303_s26  ;;  %1829 = vrot.lane.b32.xlu0 %v918_v61, %s3303_s26  ;;  %v1316_v43 = vrot.slane %v1315_v4, 1  ;;  %v922_v60 = vadd.f32 %v3629_v59, %v3736_v52  ;;  %v921_v61 = vadd.f32 %v3736_v52, %v3645_v2  ;;  %v629_v32 = vadd.f32 %v3579_v55, %v626_v46 }
 0x24e   : > { %v1301_v13 = vmax.f32 %v1299_v37, %v1300_v18  ;;  %v1320_v26 = vmax.f32 %v1318_v57, %v1319_v58  ;;  %3199 = vpow2.f32 %v1339_v5  ;;  %v924_v0 = vadd.f32 %v3653_v27, %v3736_v52 }
 0x24f   : > { %v1317_v19 = vmax.f32 %v1315_v4, %v1316_v43  ;;  %v628_v59 = vadd.f32 %v626_v46, %v3596_v63  ;;  %v923_v2 = vadd.f32 %v3736_v52, %v3662_v22  ;;  %v633_v45 = vadd.f32 %v3623_v50, %v626_v46 }
 0x250   : > { %v1302_v21 = vrot.slane %v1301_v13, 1  ;;  %v1321_v28 = vrot.slane %v1320_v26, 2  ;;  %v631_v55 = vadd.f32 %v3605_v12, %v626_v46  ;;  %v632_v27 = vadd.f32 %v626_v46, %v3639_v54 }
 0x251   : > { %1827 = vrot.lane.b32.xlu1 %v917_v56, %s3303_s26  ;;  %v1329_v29 = vsub.f32 %v3722_v6, %v1317_v19  ;;  %v1330_v51 = vsub.f32 %v3716_v9, %v1317_v19  ;;  %v630_v56 = vadd.f32 %v626_v46, %v3616_v33  ;;  %v635_v63 = vadd.f32 %v3651_v14, %v626_v46 }
 0x252   : > { %v1303_v25 = vmax.f32 %v1301_v13, %v1302_v21  ;;  %v1322_v34 = vmax.f32 %v1320_v26, %v1321_v28  ;;  %v634_v50 = vadd.f32 %v626_v46, %v3668_v35 }
 0x253   : > { %v1341_v39 = vmul.f32 1.442695, %v1329_v29  ;;  %v1343_v42 = vmul.f32 1.442695, %v1330_v51 }
 0x254   : > { %v1325_v8 = vsub.f32 %v3707_v3, %v1303_v25  ;;  %v1323_v41 = vrot.slane %v1322_v34, 1  ;;  %v1326_v9 = vsub.f32 %v3703_v31, %v1303_v25 }
 0x255   : > { %3201 = vpow2.f32 %v1341_v39 }
 0x256   : > { %v1333_v6 = vmul.f32 1.442695, %v1325_v8  ;;  %v1324_v3 = vmax.f32 %v1322_v34, %v1323_v41  ;;  %3203 = vpow2.f32 %v1343_v42  ;;  %v1335_v47 = vmul.f32 1.442695, %v1326_v9 }
 0x257   : > { %v3762_v44 = vpop.eup %3197  ;;  %v3305_v9 = vmov 0  }
 0x258   : > { %3205 = vpow2.f32 %v1333_v6  ;;  %v1331_v48 = vsub.f32 %v3726_v15, %v1324_v3  ;;  %v1332_v49 = vsub.f32 %v3718_v10, %v1324_v3  ;;  %v1355_v54 = vsel %vm345_vm0, %v3762_v44, 0.0 }
 0x259   : > { %3207 = vpow2.f32 %v1335_v47 }
 0x25a   : > { %v1345_v38 = vmul.f32 1.442695, %v1331_v48  ;;  %v1347_v53 = vmul.f32 1.442695, %v1332_v49 }
 0x25b   : > { %v3766_v31 = vpop.eup %3199 }
 0x25c   : > { %3209 = vpow2.f32 %v1345_v38  ;;  %v1358_v33 = vsel %vm345_vm0, %v3766_v31, 0.0 }
 0x25d   : > { %3211 = vpow2.f32 %v1347_v53 }
 0x262   : > { %v3770_v20 = vpop.eup %3201 }
 0x263   : > { %v3773_v30 = vpop.eup %3203  ;;  %v1361_v14 = vsel %vm345_vm0, %v3770_v20, 0.0 }
 0x264   : > { %v1364_v37 = vsel %vm345_vm0, %v3773_v30, 0.0 }
 0x265   : > { %v3776_v15 = vpop.eup %3205 }
 0x266   : > { %v3779_v23 = vpop.eup %3207  ;;  %v1349_v12 = vsel %vm345_vm0, %v3776_v15, 0.0 }
 0x267   : > { %v1352_v22 = vsel %vm345_vm0, %v3779_v23, 0.0 }
 0x269   : > { %v3782_v10 = vpop.eup %3209 }
 0x26a   : > { %v3785_v36 = vpop.eup %3211  ;;  %v1367_v35 = vsel %vm345_vm0, %v3782_v10, 0.0 }
 0x26b   : > { %1486 = vxpose.xlu0.b32.start [1/2] (short) (narrow) %v3762_v44, 16  ;;  %v1370_v1 = vsel %vm345_vm0, %v3785_v36, 0.0 }
 0x26f   : > { %1487 = vxpose.xlu0.b32.end [2/2] (short) (narrow) %v3766_v31, 16 }
 0x273   : > { %1599 = vxpose.xlu0.b32.start [1/2] (short) (narrow) %v3770_v20, 16 }
 0x277   : > { %1600 = vxpose.xlu0.b32.end [2/2] (short) (narrow) %v3773_v30, 16 }
 0x27a   : > { %1373 = vxpose.xlu1.b32.start [1/2] (short) (narrow) %v3776_v15, 16 }
 0x27e   : > { %1374 = vxpose.xlu1.b32.end [2/2] (short) (narrow) %v3779_v23, 16 }
 0x282   : > { %1712 = vxpose.xlu1.b32.start [1/2] (short) (narrow) %v3782_v10, 16 }
 0x286   : > { %1713 = vxpose.xlu1.b32.end [2/2] (short) (narrow) %v3785_v36, 16 }
 0x2a0   : > { %2007 = vrot.lane.b32.xlu0 %v922_v60, %s3303_s26 }
 0x2a1   : > { %3163 = vset.pattern.permute.xlu0 %v3305_v9 }
 0x2a4   : > { %2005 = vrot.lane.b32.xlu0 %v921_v61, %s3303_s26  ;;  %1916 = vrot.lane.b32.xlu1 %v919_v62, %s3303_s26 }
 0x2a5   : > { %3164 = vset.pattern.permute.xlu1 %v3305_v9 }
 0x2a8   : > { %2185 = vrot.lane.b32.xlu0 %v629_v32, %s3303_s26  ;;  %2096 = vrot.lane.b32.xlu1 %v924_v0, %s3303_s26 }
 0x2ac   : > { %2183 = vrot.lane.b32.xlu0 %v628_v59, %s3303_s26  ;;  %2094 = vrot.lane.b32.xlu1 %v923_v2, %s3303_s26 }
 0x2b0   : > { %2351 = vrot.lane.b32.xlu0 %v633_v45, %s3303_s26  ;;  %2268 = vrot.lane.b32.xlu1 %v631_v55, %s3303_s26 }
 0x2b4   : > { %2349 = vrot.lane.b32.xlu0 %v632_v27, %s3303_s26  ;;  %2266 = vrot.lane.b32.xlu1 %v630_v56, %s3303_s26 }
 0x2b8   : > { %2434 = vrot.lane.b32.xlu1 %v635_v63, %s3303_s26 }
 0x2bc   : > { %2432 = vrot.lane.b32.xlu1 %v634_v50, %s3303_s26 }
 0x2bf   : > { %v1830_v52 = vpop.permute.xlu0 %1829  ;;  %v1919_v18 = vpop.permute.xlu1 %1918 }
 0x2c3   : > { %v1828_v58 = vpop.permute.xlu1 %1827 }
 0x2d3   : > { %1350 = vadd.xlane.f32.xlu0 %v1349_v12 }
 0x2d7   : > { %1356 = vadd.xlane.f32.xlu0 %v1355_v54 }
 0x2db   : > { %1359 = vadd.xlane.f32.xlu0 %v1358_v33  ;;  %v3245_v33 = vld [vmem:[%s3387_s14 + $0x8] sm:$0xff] }
 0x2df   : > { %1362 = vadd.xlane.f32.xlu0 %v1361_v14 }
 0x2e0   : > { %1353 = vadd.xlane.f32.xlu1 %v1352_v22 }
 0x2e3   : > { %1368 = vadd.xlane.f32.xlu0 %v1367_v35 }
 0x2e4   : > { %1365 = vadd.xlane.f32.xlu1 %v1364_v37  ;;  %v3246_v37 = vld [vmem:[%s3387_s14] sm:$0xff] }
 0x2e7   : > { %v3833_v57 = vpop.trf.xlu0 }
 0x2e8   : > { %1371 = vadd.xlane.f32.xlu1 %v1370_v1  ;;  %3045 = vmatprep.mubr.msk.f32.mxu1 %vm345_vm0, %v3833_v57 }
 0x2eb   : > { %v3839_v4 = vpop.trf.xlu0 }
 0x2ec   : > { %3046 = vmatmul.mubr.msk.f32.vlgmr.msra.gmra.mxu1 %vm345_vm0, %v3839_v4 }
 0x2ed   : > { %3056 = vmatpush3.msra.mxu1 %v3304_v7 }
 0x2ee   : > { %3057 = vmatprep.subr.mxu1 %v3304_v7 }
 0x2ef   : > { %3058 = vmatpush3.msra.mxu1 %v3304_v7  ;;  %v1615_v43 = vpop.trf.xlu0 }
 0x2f0   : > { %3069 = vmatprep.subr.mxu1 %v1919_v18 }
 0x2f3   : > { %v1616_v26 = vpop.trf.xlu0 }
 0x2f6   : > { %v1389_v40 = vpop.trf.xlu1 }
 0x2f7   : > { %3038 = vmatprep.mubr.msk.f32.mxu0 %vm345_vm0, %v1389_v40 }
 0x2fa   : > { %v1390_v13 = vpop.trf.xlu1 }
 0x2fb   : > { %3039 = vmatmul.mubr.msk.f32.vlgmr.msra.gmra.mxu0 %vm345_vm0, %v1390_v13 }
 0x2fc   : > { %3049 = vmatpush3.msra.mxu0 %v3304_v7  ;;  %3052 = vmatprep.mubr.msk.f32.mxu0 %vm345_vm0, %v1615_v43 }
 0x2fd   : > { %3050 = vmatprep.subr.mxu0 %v3304_v7 }
 0x2fe   : > { %3051 = vmatpush3.msra.mxu0 %v3304_v7  ;;  %v1728_v16 = vpop.trf.xlu1 }
 0x2ff   : > { %3062 = vmatprep.subr.mxu0 %v1830_v52  ;;  %3053 = vmatmul.mubr.msk.f32.vlgmr.msra.gmra.mxu0 %vm345_vm0, %v1616_v26 }
 0x300   : > { %3063 = vmatpush3.msra.mxu0 %v1830_v52  ;;  %3066 = vmatprep.mubr.msk.f32.mxu0 %vm345_vm0, %v3776_v15  ;;  %v2603_v15 = vsub.s32 6, %v3487_v24 }
 0x301   : > { %3064 = vmatprep.subr.mxu0 %v1828_v58  ;;  %3059 = vmatprep.mubr.msk.f32.mxu1 %vm345_vm0, %v1728_v16 }
 0x302   : > { %3065 = vmatpush3.msra.mxu0 %v1828_v58  ;;  %v1729_v17 = vpop.trf.xlu1  ;;  %v3883_v62 = vrot.slane %v3532_v11, %v2603_v15 }
 0x303   : > { %3060 = vmatmul.mubr.msk.f32.vlgmr.msra.gmra.mxu1 %vm345_vm0, %v1729_v17  ;;  %3067 = vmatmul.mubr.msk.f32.vlgmr.msra.gmra.mxu0 %vm345_vm0, %v3779_v23 }
 0x304   : > { %3070 = vmatpush3.msra.mxu1 %v1919_v18  ;;  %3073 = vmatprep.mubr.msk.f32.mxu1 %vm345_vm0, %v3762_v44 }
 0x305   : > { %3080 = vmatprep.mubr.msk.f32.mxu0 %vm345_vm0, %v3770_v20 }
 0x312   : > { %v2008_v19 = vpop.permute.xlu0 %2007 }
 0x313   : > { %3076 = vmatprep.subr.mxu0 %v2008_v19 }
 0x314   : > { %3077 = vmatpush3.msra.mxu0 %v2008_v19 }
 0x316   : > { %v2006_v21 = vpop.permute.xlu0 %2005  ;;  %v1917_v28 = vpop.permute.xlu1 %1916 }
 0x317   : > { %3071 = vmatprep.subr.mxu1 %v1917_v28  ;;  %3078 = vmatprep.subr.mxu0 %v2006_v21 }
 0x318   : > { %3072 = vmatpush3.msra.mxu1 %v1917_v28  ;;  %3079 = vmatpush3.msra.mxu0 %v2006_v21 }
 0x319   : > { %3074 = vmatmul.mubr.msk.f32.vlgmr.msra.gmra.mxu1 %vm345_vm0, %v3766_v31  ;;  %3081 = vmatmul.mubr.msk.f32.vlgmr.msra.gmra.mxu0 %vm345_vm0, %v3773_v30 }
 0x31a   : > { %v2186_v5 = vpop.permute.xlu0 %2185  ;;  %3087 = vmatprep.mubr.msk.f32.mxu1 %vm345_vm0, %v3782_v10  ;;  %3094 = vmatprep.mubr.msk.f32.mxu0 %vm345_vm0, %v1389_v40  ;;  %v2097_v29 = vpop.permute.xlu1 %2096 }
 0x31b   : > { %3083 = vmatprep.subr.mxu1 %v2097_v29  ;;  %3090 = vmatprep.subr.mxu0 %v2186_v5 }
 0x31c   : > { %3084 = vmatpush3.msra.mxu1 %v2097_v29  ;;  %3091 = vmatpush3.msra.mxu0 %v2186_v5 }
 0x31e   : > { %v2184_v25 = vpop.permute.xlu0 %2183  ;;  %v2095_v34 = vpop.permute.xlu1 %2094 }
 0x31f   : > { %3085 = vmatprep.subr.mxu1 %v2095_v34  ;;  %3092 = vmatprep.subr.mxu0 %v2184_v25 }
 0x320   : > { %3086 = vmatpush3.msra.mxu1 %v2095_v34  ;;  %3093 = vmatpush3.msra.mxu0 %v2184_v25 }
 0x321   : > { %3088 = vmatmul.mubr.msk.f32.vlgmr.msra.gmra.mxu1 %vm345_vm0, %v3785_v36  ;;  %3095 = vmatmul.mubr.msk.f32.vlgmr.msra.gmra.mxu0 %vm345_vm0, %v1390_v13 }
 0x322   : > { %v2352_v51 = vpop.permute.xlu0 %2351  ;;  %3101 = vmatprep.mubr.msk.f32.mxu1 %vm345_vm0, %v3833_v57  ;;  %3108 = vmatprep.mubr.msk.f32.mxu0 %vm345_vm0, %v1615_v43  ;;  %v2269_v39 = vpop.permute.xlu1 %2268 }
 0x323   : > { %3097 = vmatprep.subr.mxu1 %v2269_v39  ;;  %3104 = vmatprep.subr.mxu0 %v2352_v51 }
 0x324   : > { %3098 = vmatpush3.msra.mxu1 %v2269_v39  ;;  %3105 = vmatpush3.msra.mxu0 %v2352_v51 }
 0x326   : > { %v2350_v8 = vpop.permute.xlu0 %2349  ;;  %v2267_v41 = vpop.permute.xlu1 %2266 }
 0x327   : > { %3099 = vmatprep.subr.mxu1 %v2267_v41  ;;  %3106 = vmatprep.subr.mxu0 %v2350_v8 }
 0x328   : > { %3100 = vmatpush3.msra.mxu1 %v2267_v41  ;;  %3107 = vmatpush3.msra.mxu0 %v2350_v8 }
 0x329   : > { %3102 = vmatmul.mubr.msk.f32.vlgmr.msra.gmra.mxu1 %vm345_vm0, %v3839_v4  ;;  %3109 = vmatmul.mubr.msk.f32.vlgmr.msra.gmra.mxu0 %vm345_vm0, %v1616_v26 }
 0x32a   : > { %3115 = vmatprep.mubr.msk.f32.mxu1 %vm345_vm0, %v1728_v16  ;;  %v2435_v42 = vpop.permute.xlu1 %2434 }
 0x32b   : > { %3111 = vmatprep.subr.mxu1 %v2435_v42 }
 0x32c   : > { %3112 = vmatpush3.msra.mxu1 %v2435_v42 }
 0x32e   : > { %v2433_v7 = vpop.permute.xlu1 %2432 }
 0x32f   : > { %3113 = vmatprep.subr.mxu1 %v2433_v7 }
 0x330   : > { %3114 = vmatpush3.msra.mxu1 %v2433_v7 }
 0x331   : > { %3116 = vmatmul.mubr.msk.f32.vlgmr.msra.gmra.mxu1 %vm345_vm0, %v1729_v17 }
 0x35c   : > { %v1351_v3 = vpop.xlane.xlu0 %1350 }
 0x35d   : > { %v2513_v47 = vmax.f32 %v1351_v3, 1e-30 }
 0x360   : > { %v1357_v48 = vpop.xlane.xlu0 %1356 }
 0x361   : > { %v2515_v27 = vmax.f32 %v1357_v48, 1e-30 }
 0x364   : > { %v1360_v36 = vpop.xlane.xlu0 %1359 }
 0x365   : > { %v2516_v12 = vmax.f32 %v1360_v36, 1e-30 }
 0x368   : > { %v1363_v56 = vpop.xlane.xlu0 %1362 }
 0x369   : > { %v1354_v6 = vpop.xlane.xlu1 %1353  ;;  %v2517_v35 = vmax.f32 %v1363_v56, 1e-30  ;;  %v3252_v56 = vld [vmem:[%s3387_s14 + $0x30] sm:$0xff] }
 0x36a   : > { %v2514_v44 = vmax.f32 %v1354_v6, 1e-30 }
 0x36c   : > { %3213 = vrcp.f32 %v2514_v44  ;;  %v1369_v43 = vpop.xlane.xlu0 %1368 }
 0x36d   : > { %3215 = vrcp.f32 %v2513_v47  ;;  %v1366_v45 = vpop.xlane.xlu1 %1365  ;;  %v2519_v16 = vmax.f32 %v1369_v43, 1e-30  ;;  %v3247_v47 = vld [vmem:[%s3387_s14 + $0x18] sm:$0xff] }
 0x36e   : > { %v2518_v54 = vmax.f32 %v1366_v45, 1e-30  ;;  %v3251_v45 = vld [vmem:[%s3387_s14 + $0x38] sm:$0xff] }
 0x371   : > { %v1372_v40 = vpop.xlane.xlu1 %1371 }
 0x372   : > { %v2520_v26 = vmax.f32 %v1372_v40, 1e-30 }
 0x379   : > { %v3214_v46 = vpop.eup %3213 }
 0x37a   : > { %v3216_v2 = vpop.eup %3215 }
 0x3ac   : > { %v3047_v31 = vpop.f32.mrf.mxu1 }
 0x3ad   : > { %v2540_v38 = vmax.f32 %v3047_v31, 1e-30  ;;  %v3248_v31 = vld [vmem:[%s3387_s14 + $0x28] sm:$0xff] }
 0x3ae   : > { %v1590_v10 = vpop.f32.mrf.mxu1 }
 0x3af   : > { %v2539_v61 = vmax.f32 %v1590_v10, 1e-30 }
 0x3bb   : > { %v3040_v49 = vpop.f32.mrf.mxu0 }
 0x3bc   : > { %v2538_v20 = vmax.f32 %v3040_v49, 1e-30 }
 0x3bd   : > { %v1477_v53 = vpop.f32.mrf.mxu0 }
 0x3be   : > { %3217 = vrcp.f32 %v2538_v20  ;;  %v2537_v30 = vmax.f32 %v1477_v53, 1e-30 }
 0x3bf   : > { %3219 = vrcp.f32 %v2540_v38  ;;  %v3054_v23 = vpop.f32.mrf.mxu0 }
 0x3c0   : > { %3221 = vrcp.f32 %v2537_v30  ;;  %v2542_v0 = vmax.f32 %v3054_v23, 1e-30  ;;  %v3249_v30 = vld [vmem:[%s3387_s14 + $0x10] sm:$0xff]  ;;  %v3250_v23 = vld [vmem:[%s3387_s14 + $0x20] sm:$0xff] }
 0x3c1   : > { %v1703_v60 = vpop.f32.mrf.mxu0  ;;  %3223 = vrcp.f32 %v2539_v61 }
 0x3c2   : > { %3225 = vrcp.f32 %v2542_v0  ;;  %v2541_v52 = vmax.f32 %v1703_v60, 1e-30 }
 0x3c3   : > { %v3068_v32 = vpop.f32.mrf.mxu0  ;;  %v3061_v11 = vpop.f32.mrf.mxu1  ;;  %3227 = vrcp.f32 %v2515_v27 }
 0x3c4   : > { %v2530_v59 = vmul.f32 %v3214_v46, %v3068_v32  ;;  %3229 = vrcp.f32 %v2516_v12  ;;  %v2544_v17 = vmax.f32 %v3061_v11, 1e-30  ;;  %v3253_v11 = vld [vmem:[%s3974_s2] sm:$0xff] }
 0x3c5   : > { %v1905_v55 = vpop.f32.mrf.mxu0  ;;  %v1816_v4 = vpop.f32.mrf.mxu1  ;;  %3231 = vrcp.f32 %v2518_v54 }
 0x3c6   : > { %v2606_v63 = vmul.f32 %v3883_v62, %v2530_v59  ;;  %v2529_v50 = vmul.f32 %v3216_v2, %v1905_v55  ;;  %3233 = vrcp.f32 %v2517_v35  ;;  %v2543_v13 = vmax.f32 %v1816_v4, 1e-30 }
 0x3c7   : > { %3235 = vrcp.f32 %v2541_v52 }
 0x3c8   : > { %v2614_v14 = vadd.f32 %v3245_v33, %v2606_v63  ;;  %v2605_v22 = vmul.f32 %v3883_v62, %v2529_v50  ;;  %3237 = vrcp.f32 %v2543_v13  ;;  %v2631_v50 = vsub.s32 7, %v3487_v24 }
 0x3c9   : > { %3239 = vrcp.f32 %v2520_v26 }
 0x3ca   : > { %2622 = vst.msk [vmem:[%s3890_s29 + $0x8] sm:$0xff] %vm345_vm0, %v2614_v14  ;;  %v2613_v57 = vadd.f32 %v3246_v37, %v2605_v22  ;;  %3241 = vrcp.f32 %v2519_v16  ;;  %v2632_v54 = vrot.slane %v3253_v11, %v2631_v50  ;;  %v3256_v16 = vld [vmem:[%s3393_s17 + $0x18] sm:$0xff] }
 0x3cb   : > { %v3218_v1 = vpop.eup %3217  ;;  %3243 = vrcp.f32 %v2544_v17 }
 0x3cc   : > { %v3220_v18 = vpop.eup %3219  ;;  %2621 = vst.msk [vmem:[%s3890_s29] sm:$0xff] %vm345_vm0, %v2613_v57  ;;  %2560 = vperm.xlu1 %3164, %v3218_v1   ;;  %v3254_v57 = vld [vmem:[%s3393_s17 + $0x8] sm:$0xff] }
 0x3cd   : > { %v3222_v58 = vpop.eup %3221 }
 0x3ce   : > { %2555 = vperm.xlu0 %3163, %v3222_v58   ;;  %v3224_v19 = vpop.eup %3223  ;;  %v3255_v58 = vld [vmem:[%s3393_s17] sm:$0xff] }
 0x3cf   : > { %v3226_v21 = vpop.eup %3225 }
 0x3d0   : > { %2570 = vperm.xlu1 %3164, %v3220_v18   ;;  %v3228_v28 = vpop.eup %3227 }
 0x3d1   : > { %v3230_v5 = vpop.eup %3229 }
 0x3d2   : > { %v3232_v29 = vpop.eup %3231 }
 0x3d3   : > { %v3234_v51 = vpop.eup %3233 }
 0x3d4   : > { %2565 = vperm.xlu1 %3164, %v3224_v19   ;;  %v3236_v41 = vpop.eup %3235 }
 0x3d5   : > { %v3238_v53 = vpop.eup %3237 }
 0x3d6   : > { %v3240_v36 = vpop.eup %3239 }
 0x3d7   : > { %v3242_v61 = vpop.eup %3241 }
 0x3d8   : > { %2580 = vperm.xlu1 %3164, %v3226_v21   ;;  %v3244_v32 = vpop.eup %3243 }
 0x3d9   : > { %v3075_v25 = vpop.f32.mrf.mxu1  ;;  %v3082_v34 = vpop.f32.mrf.mxu0 }
 0x3da   : > { %v2532_v39 = vmul.f32 %v3230_v5, %v3075_v25  ;;  %v2534_v8 = vmul.f32 %v3232_v29, %v3082_v34  ;;  %v3257_v29 = vld [vmem:[%s3393_s17 + $0x10] sm:$0xff] }
 0x3db   : > { %v1994_v42 = vpop.f32.mrf.mxu1  ;;  %v2083_v7 = vpop.f32.mrf.mxu0 }
 0x3dc   : > { %v2608_v9 = vmul.f32 %v3883_v62, %v2532_v39  ;;  %v2610_v6 = vmul.f32 %v3883_v62, %v2534_v8  ;;  %v2531_v3 = vmul.f32 %v3228_v28, %v1994_v42  ;;  %v2533_v44 = vmul.f32 %v3234_v51, %v2083_v7  ;;  %2575 = vperm.xlu1 %3164, %v3236_v41   ;;  %v3258_v42 = vld [vmem:[%s3393_s17 + $0x28] sm:$0xff] }
 0x3de   : > { %v2616_v48 = vadd.f32 %v3247_v47, %v2608_v9  ;;  %v2618_v49 = vadd.f32 %v3248_v31, %v2610_v6  ;;  %v2607_v38 = vmul.f32 %v3883_v62, %v2531_v3  ;;  %v2609_v20 = vmul.f32 %v3883_v62, %v2533_v44  ;;  %v3259_v47 = vld [vmem:[%s3393_s17 + $0x20] sm:$0xff] }
 0x3e0   : > { %2624 = vst.msk [vmem:[%s3890_s29 + $0x18] sm:$0xff] %vm345_vm0, %v2616_v48  ;;  %2626 = vst.msk [vmem:[%s3890_s29 + $0x28] sm:$0xff] %vm345_vm0, %v2618_v49  ;;  %v2615_v15 = vadd.f32 %v3249_v30, %v2607_v38  ;;  %v2617_v10 = vadd.f32 %v3250_v23, %v2609_v20  ;;  %2585 = vperm.xlu1 %3164, %v3238_v53   ;;  %v3260_v20 = vld [vmem:[%s3393_s17 + $0x30] sm:$0xff]  ;;  %v3261_v23 = vld [vmem:[%s3393_s17 + $0x38] sm:$0xff] }
 0x3e1   : > { %v3089_v60 = vpop.f32.mrf.mxu1  ;;  %v3096_v12 = vpop.f32.mrf.mxu0 }
 0x3e2   : > { %2623 = vst.msk [vmem:[%s3890_s29 + $0x10] sm:$0xff] %vm345_vm0, %v2615_v15  ;;  %2625 = vst.msk [vmem:[%s3890_s29 + $0x20] sm:$0xff] %vm345_vm0, %v2617_v10  ;;  %v2536_v46 = vmul.f32 %v3240_v36, %v3089_v60 }
 0x3e3   : > { %v2172_v0 = vpop.f32.mrf.mxu1 }
 0x3e4   : > { %v2612_v59 = vmul.f32 %v3883_v62, %v2536_v46  ;;  %v2535_v2 = vmul.f32 %v3242_v61, %v2172_v0  ;;  %2590 = vperm.xlu1 %3164, %v3244_v32  }
 0x3e6   : > { %v2620_v55 = vadd.f32 %v3251_v45, %v2612_v59  ;;  %v2611_v27 = vmul.f32 %v3883_v62, %v2535_v2  ;;  %v2255_v62 = vpop.f32.mrf.mxu0 }
 0x3e8   : > { %2628 = vst.msk [vmem:[%s3890_s29 + $0x38] sm:$0xff] %vm345_vm0, %v2620_v55  ;;  %v2619_v63 = vadd.f32 %v3252_v56, %v2611_v27 }
 0x3e9   : > { %v3103_v37 = vpop.f32.mrf.mxu1  ;;  %v3110_v21 = vpop.f32.mrf.mxu0 }
 0x3ea   : > { %2627 = vst.msk [vmem:[%s3890_s29 + $0x30] sm:$0xff] %vm345_vm0, %v2619_v63 }
 0x3eb   : > { %v2338_v13 = vpop.f32.mrf.mxu1  ;;  %v2421_v51 = vpop.f32.mrf.mxu0 }
 0x3f1   : > { %v3117_v8 = vpop.f32.mrf.mxu1 }
 0x3f3   : > { %v2504_v3 = vpop.f32.mrf.mxu1 }
 0x447   : > { %v2561_v33 = vpop.permute.xlu1 %2560 }
 0x448   : > { %v2594_v14 = vmul.f32 %v3096_v12, %v2561_v33 }
 0x449   : > { %v2556_v22 = vpop.permute.xlu0 %2555 }
 0x44a   : > { %v2634_v35 = vmul.f32 %v2632_v54, %v2594_v14  ;;  %v2593_v52 = vmul.f32 %v2556_v22, %v2255_v62 }
 0x44b   : > { %v2571_v24 = vpop.permute.xlu1 %2570 }
 0x44c   : > { %v2642_v1 = vadd.f32 %v3254_v57, %v2634_v35  ;;  %v2633_v4 = vmul.f32 %v2632_v54, %v2593_v52  ;;  %v2596_v18 = vmul.f32 %v3103_v37, %v2571_v24 }
 0x44e   : > { %2650 = vst.msk [vmem:[%s3931_s9 + $0x8] sm:$0xff] %vm345_vm0, %v2642_v1  ;;  %v2641_v40 = vadd.f32 %v3255_v58, %v2633_v4  ;;  %v2636_v43 = vmul.f32 %v2632_v54, %v2596_v18 }
 0x44f   : > { %v2566_v26 = vpop.permute.xlu1 %2565 }
 0x450   : > { %2649 = vst.msk [vmem:[%s3931_s9] sm:$0xff] %vm345_vm0, %v2641_v40  ;;  %v2644_v17 = vadd.f32 %v3256_v16, %v2636_v43  ;;  %v2595_v19 = vmul.f32 %v2566_v26, %v2338_v13 }
 0x452   : > { %2652 = vst.msk [vmem:[%s3931_s9 + $0x18] sm:$0xff] %vm345_vm0, %v2644_v17  ;;  %v2635_v28 = vmul.f32 %v2632_v54, %v2595_v19 }
 0x453   : > { %v2581_v5 = vpop.permute.xlu1 %2580 }
 0x454   : > { %v2643_v25 = vadd.f32 %v3257_v29, %v2635_v28  ;;  %v2598_v34 = vmul.f32 %v3110_v21, %v2581_v5 }
 0x456   : > { %2651 = vst.msk [vmem:[%s3931_s9 + $0x10] sm:$0xff] %vm345_vm0, %v2643_v25  ;;  %v2638_v39 = vmul.f32 %v2632_v54, %v2598_v34 }
 0x457   : > { %v2576_v41 = vpop.permute.xlu1 %2575 }
 0x458   : > { %v2646_v7 = vadd.f32 %v3258_v42, %v2638_v39  ;;  %v2597_v9 = vmul.f32 %v2576_v41, %v2421_v51 }
 0x45a   : > { %2654 = vst.msk [vmem:[%s3931_s9 + $0x28] sm:$0xff] %vm345_vm0, %v2646_v7  ;;  %v2637_v6 = vmul.f32 %v2632_v54, %v2597_v9 }
 0x45b   : > { %v2586_v44 = vpop.permute.xlu1 %2585 }
 0x45c   : > { %v2645_v48 = vadd.f32 %v3259_v47, %v2637_v6  ;;  %v2599_v31 = vmul.f32 %v2586_v44, %v2504_v3 }
 0x45e   : > { %2653 = vst.msk [vmem:[%s3931_s9 + $0x20] sm:$0xff] %vm345_vm0, %v2645_v48  ;;  %v2639_v49 = vmul.f32 %v2632_v54, %v2599_v31 }
 0x45f   : > { %v2591_v38 = vpop.permute.xlu1 %2590 }
 0x460   : > { %v2647_v53 = vadd.f32 %v3260_v20, %v2639_v49  ;;  %v2600_v30 = vmul.f32 %v3117_v8, %v2591_v38 }
 0x462   : > { %2655 = vst.msk [vmem:[%s3931_s9 + $0x30] sm:$0xff] %vm345_vm0, %v2647_v53  ;;  %v2640_v15 = vmul.f32 %v2632_v54, %v2600_v30 }
 0x464   : > { %v2648_v10 = vadd.f32 %v3261_v23, %v2640_v15 }
 0x466   : > { %2656 = vst.msk [vmem:[%s3931_s9 + $0x38] sm:$0xff] %vm345_vm0, %v2648_v10 }
 0x467 PF: > { %s16_s22 = sadd.s32 1, %s3300_s22   ;;  %s3978_s18 = smov %s3292_s20 }
 0x468   : > { %p13_p7 = scmp.ge.s32.totalorder %s16_s22, 6   ;;  %s3979_s19 = smov %s3296_s21 }
 0x469   : > { %s3980_s20 = smov %s3983_s23  ;;  %s3981_s21 = smov %s3987_s24 }
 0x46a   :  { %15 = sbr.rel (!%p13_p7) target bundleno = 3 (0x3), region = 81 }

</bundles_post_ra>
